<compile_context>
chip_gen: v6e
topology: v6e:2x2x1
jax: 0.10.0
libtpu: 0.0.40
codegen_flags: <defaults>
</compile_context>

<pallas_src>
import math
import functools

import jax
import jax.numpy as jnp
import numpy as np
from jax.experimental import pallas as pl
from jax.experimental.pallas import tpu as pltpu


def _round_up(a: int, m: int) -> int:
    return (a + m - 1) // m * m


def _styled_conv_kernel(x_ref, w_ref, noise_ref, bias_ref, out_ref, *,
                        k: int, cin: int, tr: int, w_img: int,
                        negative_slope: float):
    """Modulated 'same' conv + noise + bias + leaky-relu for one row tile.

    x_ref:     (tr + 2p, w_img + 2p, cin)  bf16 halo tile (p = k // 2)
    w_ref:     (k*k*cin, cout_p)           bf16 per-batch folded weights (sqrt2 folded)
    noise_ref: (tr, w_img)                 f32  noise * noise_weight * sqrt2
    bias_ref:  (1, cout_p)                 f32  act bias * sqrt2
    out_ref:   (tr, w_img, cout_p)
    """
    cout_p = out_ref.shape[-1]
    acc = jnp.zeros((tr * w_img, cout_p), jnp.float32)
    # k*k taps as accumulated MXU matmuls over static slices of the VMEM tile.
    for dy in range(k):
        for dx in range(k):
            t = dy * k + dx
            a = x_ref[dy:dy + tr, dx:dx + w_img, :].reshape(tr * w_img, cin)
            acc += jnp.dot(a, w_ref[t * cin:(t + 1) * cin, :],
                           preferred_element_type=jnp.float32)
    acc = acc.reshape(tr, w_img, cout_p)
    acc = acc + noise_ref[...][:, :, None]              # lane broadcast over Cout
    acc = acc + bias_ref[...].reshape(1, 1, cout_p)     # row broadcast
    acc = jnp.maximum(acc, negative_slope * acc)        # leaky-relu (sqrt2 pre-folded)
    out_ref[...] = acc.astype(out_ref.dtype)


def _pick_tile_rows(h, w, p, cin, cout_p, out_bytes, *, target_rows=8192,
                    budget_bytes=12 * 1024 * 1024):
    """Rows per tile: multiple of 8, aiming at ~target_rows matmul rows per
    grid step, shrunk until the double-buffered footprint fits the budget."""
    tr = min(_round_up(h, 8), max(8, _round_up(max(1, target_rows // w), 8)))

    def step_bytes(t):
        xb = (t + 2 * p) * (w + 2 * p) * cin * 2        # bf16 halo tile
        nb = t * w * 4                                   # f32 noise tile
        ob = t * w * cout_p * out_bytes                  # output tile
        return 2 * (xb + nb + ob) + t * w * cout_p * 4   # dbl-buffer + f32 acc

    while tr > 8 and step_bytes(tr) > budget_bytes:
        tr -= 8
    return tr


def styled_conv(x, style, noise, params, *, kernel_size, demodulate=True,
                upsample=False, tile_rows=None, act_dtype=jnp.bfloat16,
                out_dtype=jnp.bfloat16, nchw_out=False):
    """StyledConv forward (ModulatedConv2d + NoiseInjection + FusedLeakyReLU).

    x: (B, Cin, H, W) NCHW, style: (B, style_dim), noise: (B, 1, H, W).
    Returns NHWC (B, H, W, Cout) by default (nchw_out=True for NCHW).
    """
    if upsample:
        # TODO(synk): upsample path (conv_transpose2d + Blur) not implemented.
        raise NotImplementedError("styled_conv: upsample=True is not supported")

    B, Cin, H, W = x.shape
    k = kernel_size
    p = k // 2
    Cout = params["weight"].shape[1]
    S = params["w_mod"].shape[1]
    KC = k * k * Cin
    Cp = _round_up(Cout, 128)          # lane-dense output / full MXU width
    act_gain = math.sqrt(2.0)          # FusedLeakyReLU gain, folded into operands

    # ---- style modulation + demodulation folded into tiny per-batch weights (f32) ----
    mod_scale = 1.0 / math.sqrt(S)                 # EqualLinear scale (lr_mul = 1)
    conv_scale = 1.0 / math.sqrt(Cin * k * k)      # ModulatedConv2d scale
    s = style.astype(jnp.float32) @ (params["w_mod"] * mod_scale).T + params["b_mod"]
    w_b = (conv_scale * params["weight"][0].astype(jnp.float32))[None] \
        * s[:, None, :, None, None]                                    # (B,Cout,Cin,k,k)
    if demodulate:
        demod = jax.lax.rsqrt(jnp.sum(w_b * w_b, axis=(2, 3, 4)) + 1e-8)
        w_b = w_b * demod[:, :, None, None, None]
    w_b = w_b * act_gain
    # pack as (B, (dy*k + dx)*Cin + cin, Cout); pad Cout -> Cp with zero columns
    w_eff = jnp.transpose(w_b, (0, 3, 4, 2, 1)).reshape(B, KC, Cout)
    w_eff = jnp.pad(w_eff, ((0, 0), (0, 0), (0, Cp - Cout))).astype(act_dtype)

    bias = jnp.pad(params["act_bias"].astype(jnp.float32).reshape(1, Cout),
                   ((0, 0), (0, Cp - Cout))) * act_gain

    # ---- tiling (cdiv grid with padded bottom rows; no divisor hunting) ----
    out_bytes = jnp.dtype(out_dtype).itemsize
    if tile_rows is None:
        tr = _pick_tile_rows(H, W, p, Cin, Cp, out_bytes)
    else:
        tr = max(8, _round_up(min(tile_rows, _round_up(H, 8)), 8))
    n_tiles = (H + tr - 1) // tr
    Hp = n_tiles * tr                  # padded row count (extra rows are zero)

    # ---- overlapping, zero-padded NHWC row tiles (halo = p rows / cols) ----
    x_nhwc = jnp.transpose(x, (0, 2, 3, 1)).astype(act_dtype)           # (B,H,W,Cin)
    x_padded = jnp.pad(x_nhwc, ((0, 0), (p, p + Hp - H), (p, p), (0, 0)))
    x_tiles = jnp.stack([x_padded[:, i * tr:i * tr + tr + 2 * p]
                         for i in range(n_tiles)], axis=1)  # (B,nt,tr+2p,W+2p,Cin)

    # noise pre-scaled by noise_weight * sqrt2 (drops an in-kernel multiply)
    noise_s = (jnp.asarray(params["noise_weight"], jnp.float32) * act_gain
               * noise[:, 0].astype(jnp.float32))
    noise_s = jnp.pad(noise_s, ((0, 0), (0, Hp - H), (0, 0)))           # (B, Hp, W)

    kernel = functools.partial(_styled_conv_kernel, k=k, cin=Cin, tr=tr,
                               w_img=W, negative_slope=0.2)

    # VMEM limit from the real footprint (double-buffered operands + f32 acc)
    xb = (tr + 2 * p) * (W + 2 * p) * Cin * 2
    need = 2 * (xb + KC * Cp * 2 + tr * W * 4 + Cp * 4 + tr * W * Cp * out_bytes) \
        + tr * W * Cp * 4 + tr * W * Cin * 2
    vmem_limit = int(max(16 << 20, min(40 << 20, need + (4 << 20))))
    vmem_limit = int(max(vmem_limit, need + (2 << 20)))

    out = pl.pallas_call(
        kernel,
        out_shape=jax.ShapeDtypeStruct((B, Hp, W, Cp), out_dtype),
        grid=(B, n_tiles),
        in_specs=[
            # halo'd activation row tile
            pl.BlockSpec((None, None, tr + 2 * p, W + 2 * p, Cin),
                         lambda b, i: (b, i, 0, 0, 0)),
            # per-batch folded weights: VMEM-resident across the row-tile axis
            pl.BlockSpec((None, KC, Cp), lambda b, i: (b, 0, 0)),
            # pre-scaled noise tile
            pl.BlockSpec((None, tr, W), lambda b, i: (b, i, 0)),
            # FusedLeakyReLU bias (sqrt2 folded, Cout padded)
            pl.BlockSpec((1, Cp), lambda b, i: (0, 0)),
        ],
        out_specs=pl.BlockSpec((None, tr, W, Cp), lambda b, i: (b, i, 0, 0)),
        compiler_params=pltpu.CompilerParams(
            # NOTE: on v7x (2 TCs) with B == 1, verify via xprof that the
            # megacore split lands on the row-tile axis rather than batch.
            dimension_semantics=("parallel", "parallel"),
            vmem_limit_bytes=vmem_limit),
    )(x_tiles, w_eff, noise_s, bias)

    out = out[:, :H, :, :Cout]                 # drop row padding & zero channels
    if nchw_out:
        out = jnp.transpose(out, (0, 3, 1, 2))
    return out


def reference(x, style, noise, params, *, kernel_size, demodulate=True):
    """Pure-JAX mirror of the PyTorch fused forward path (NCHW, for validation)."""
    B, Cin, H, W = x.shape
    k = kernel_size
    S = params["w_mod"].shape[1]
    mod_scale = 1.0 / math.sqrt(S)
    conv_scale = 1.0 / math.sqrt(Cin * k * k)

    s = style @ (params["w_mod"] * mod_scale).T + params["b_mod"]    # (B, Cin)
    w = conv_scale * params["weight"] * s[:, None, :, None, None]    # (B,Cout,Cin,k,k)
    if demodulate:
        demod = jax.lax.rsqrt(jnp.sum(w * w, axis=(2, 3, 4)) + 1e-8)
        w = w * demod[:, :, None, None, None]
    outs = []
    for b in range(B):
        o = jax.lax.conv_general_dilated(
            x[b:b + 1], w[b], window_strides=(1, 1),
            padding=[(k // 2, k // 2), (k // 2, k // 2)],
            dimension_numbers=("NCHW", "OIHW", "NCHW"),
            precision=jax.lax.Precision.HIGHEST)
        outs.append(o)
    out = jnp.concatenate(outs, axis=0)
    out = out + params["noise_weight"] * noise
    out = out + params["act_bias"][None, :, None, None]
    out = jnp.where(out >= 0, out, 0.2 * out) * math.sqrt(2.0)
    return out


if __name__ == "__main__":
    B, Cin, Cout, K, S, H, W = 2, 4, 8, 3, 32, 16, 16

    key = jax.random.PRNGKey(0)
    kx, ks, kn, kwm, kw, kb = jax.random.split(key, 6)

    x = jax.random.normal(kx, (B, Cin, H, W), jnp.float32)
    style = jax.random.normal(ks, (B, S), jnp.float32)
    noise = jax.random.normal(kn, (B, 1, H, W), jnp.float32)

    # Parameter shapes follow the module's __init__ (noise_weight / act_bias are
    # zero-init in the module; small nonzero values here to exercise those paths).
    params = {
        "w_mod": jax.random.normal(kwm, (Cin, S), jnp.float32),      # EqualLinear weight
        "b_mod": jnp.ones((Cin,), jnp.float32),                      # bias_init = 1
        "weight": jax.random.normal(kw, (1, Cout, Cin, K, K), jnp.float32),
        "noise_weight": jnp.float32(0.1),
        "act_bias": 0.01 * jax.random.normal(kb, (Cout,), jnp.float32),
    }

    # tile_rows=8 exercises the row-tiled grid (grid = (2, 2)) at this toy size.
    out = styled_conv(x, style, noise, params, kernel_size=K,
                      demodulate=True, tile_rows=8)
    out = jax.block_until_ready(out)

    ref = reference(x, style, noise, params, kernel_size=K, demodulate=True)
    out_nchw = jnp.transpose(out.astype(jnp.float32), (0, 3, 1, 2))
    # bf16 MXU matmul + bf16 output store vs. f32 HIGHEST reference.
    np.testing.assert_allclose(np.asarray(out_nchw), np.asarray(ref),
                               atol=5e-2, rtol=5e-2)
    print("KERNEL_OK")
</pallas_src>

<mosaic_0001>
module attributes {stable_mosaic.version = 11 : i64} {
  func.func @_styled_conv_kernel(%arg0: i32, %arg1: i32, %arg2: memref<1x1x10x18x4xbf16, #tpu.memory_space<vmem>>, %arg3: memref<1x36x128xbf16, #tpu.memory_space<vmem>>, %arg4: memref<1x8x16xf32, #tpu.memory_space<vmem>>, %arg5: memref<1x128xf32, #tpu.memory_space<vmem>>, %arg6: memref<1x8x16x128xbf16, #tpu.memory_space<vmem>>) attributes {dimension_semantics = [#tpu.dimension_semantics<parallel>, #tpu.dimension_semantics<parallel>], iteration_bounds = array<i64: 2, 2>, scalar_prefetch = 0 : i64, scratch_operands = 0 : i64, tpu.core_type = #tpu.core_type<tc>, window_params = [{transform_indices = @transform_0, window_bounds = array<i64: 1, 1, 10, 18, 4>}, {transform_indices = @transform_1, window_bounds = array<i64: 1, 36, 128>}, {transform_indices = @transform_2, window_bounds = array<i64: 1, 8, 16>}, {pipeline_mode = #tpu.pipeline_mode<synchronous>, transform_indices = @transform_3, window_bounds = array<i64: 1, 128>}, {transform_indices = @transform_4, window_bounds = array<i64: 1, 8, 16, 128>}]} {
    %cst = arith.constant 0.000000e+00 : f32
    %0 = vector.broadcast %cst : f32 to vector<128x128xf32>
    %c0 = arith.constant 0 : index
    %c0_0 = arith.constant 0 : index
    %c0_1 = arith.constant 0 : index
    %c0_2 = arith.constant 0 : index
    %c0_3 = arith.constant 0 : index
    %1 = vector.load %arg2[%c0, %c0_0, %c0_1, %c0_2, %c0_3] : memref<1x1x10x18x4xbf16, #tpu.memory_space<vmem>>, vector<1x1x8x16x4xbf16>
    %2 = vector.shape_cast %1 : vector<1x1x8x16x4xbf16> to vector<8x16x4xbf16>
    %3 = vector.shape_cast %2 : vector<8x16x4xbf16> to vector<128x4xbf16>
    %c0_4 = arith.constant 0 : index
    %c0_5 = arith.constant 0 : index
    %c0_6 = arith.constant 0 : index
    %4 = vector.load %arg3[%c0_4, %c0_5, %c0_6] : memref<1x36x128xbf16, #tpu.memory_space<vmem>>, vector<1x4x128xbf16>
    %5 = vector.shape_cast %4 : vector<1x4x128xbf16> to vector<4x128xbf16>
    %cst_7 = arith.constant dense<0.000000e+00> : vector<128x128xf32>
    %6 = tpu.matmul %3, %5, %cst_7 {dimension_numbers = #tpu.dot_dimension_numbers<[1], [0], [0], [1], [0, 0, 1, 1], [], []>} : vector<128x4xbf16>, vector<4x128xbf16>, vector<128x128xf32> -> vector<128x128xf32>
    %7 = arith.addf %0, %6 : vector<128x128xf32>
    %c0_8 = arith.constant 0 : index
    %c0_9 = arith.constant 0 : index
    %c0_10 = arith.constant 0 : index
    %c1 = arith.constant 1 : index
    %c0_11 = arith.constant 0 : index
    %8 = vector.load %arg2[%c0_8, %c0_9, %c0_10, %c1, %c0_11] : memref<1x1x10x18x4xbf16, #tpu.memory_space<vmem>>, vector<1x1x8x16x4xbf16>
    %9 = vector.shape_cast %8 : vector<1x1x8x16x4xbf16> to vector<8x16x4xbf16>
    %10 = vector.shape_cast %9 : vector<8x16x4xbf16> to vector<128x4xbf16>
    %c0_12 = arith.constant 0 : index
    %c4 = arith.constant 4 : index
    %c0_13 = arith.constant 0 : index
    %11 = vector.load %arg3[%c0_12, %c4, %c0_13] : memref<1x36x128xbf16, #tpu.memory_space<vmem>>, vector<1x4x128xbf16>
    %12 = vector.shape_cast %11 : vector<1x4x128xbf16> to vector<4x128xbf16>
    %cst_14 = arith.constant dense<0.000000e+00> : vector<128x128xf32>
    %13 = tpu.matmul %10, %12, %cst_14 {dimension_numbers = #tpu.dot_dimension_numbers<[1], [0], [0], [1], [0, 0, 1, 1], [], []>} : vector<128x4xbf16>, vector<4x128xbf16>, vector<128x128xf32> -> vector<128x128xf32>
    %14 = arith.addf %7, %13 : vector<128x128xf32>
    %c0_15 = arith.constant 0 : index
    %c0_16 = arith.constant 0 : index
    %c0_17 = arith.constant 0 : index
    %c2 = arith.constant 2 : index
    %c0_18 = arith.constant 0 : index
    %15 = vector.load %arg2[%c0_15, %c0_16, %c0_17, %c2, %c0_18] : memref<1x1x10x18x4xbf16, #tpu.memory_space<vmem>>, vector<1x1x8x16x4xbf16>
    %16 = vector.shape_cast %15 : vector<1x1x8x16x4xbf16> to vector<8x16x4xbf16>
    %17 = vector.shape_cast %16 : vector<8x16x4xbf16> to vector<128x4xbf16>
    %c0_19 = arith.constant 0 : index
    %c8 = arith.constant 8 : index
    %c0_20 = arith.constant 0 : index
    %18 = vector.load %arg3[%c0_19, %c8, %c0_20] : memref<1x36x128xbf16, #tpu.memory_space<vmem>>, vector<1x4x128xbf16>
    %19 = vector.shape_cast %18 : vector<1x4x128xbf16> to vector<4x128xbf16>
    %cst_21 = arith.constant dense<0.000000e+00> : vector<128x128xf32>
    %20 = tpu.matmul %17, %19, %cst_21 {dimension_numbers = #tpu.dot_dimension_numbers<[1], [0], [0], [1], [0, 0, 1, 1], [], []>} : vector<128x4xbf16>, vector<4x128xbf16>, vector<128x128xf32> -> vector<128x128xf32>
    %21 = arith.addf %14, %20 : vector<128x128xf32>
    %c0_22 = arith.constant 0 : index
    %c0_23 = arith.constant 0 : index
    %c1_24 = arith.constant 1 : index
    %c0_25 = arith.constant 0 : index
    %c0_26 = arith.constant 0 : index
    %22 = vector.load %arg2[%c0_22, %c0_23, %c1_24, %c0_25, %c0_26] : memref<1x1x10x18x4xbf16, #tpu.memory_space<vmem>>, vector<1x1x8x16x4xbf16>
    %23 = vector.shape_cast %22 : vector<1x1x8x16x4xbf16> to vector<8x16x4xbf16>
    %24 = vector.shape_cast %23 : vector<8x16x4xbf16> to vector<128x4xbf16>
    %c0_27 = arith.constant 0 : index
    %c12 = arith.constant 12 : index
    %c0_28 = arith.constant 0 : index
    %25 = vector.load %arg3[%c0_27, %c12, %c0_28] : memref<1x36x128xbf16, #tpu.memory_space<vmem>>, vector<1x4x128xbf16>
    %26 = vector.shape_cast %25 : vector<1x4x128xbf16> to vector<4x128xbf16>
    %cst_29 = arith.constant dense<0.000000e+00> : vector<128x128xf32>
    %27 = tpu.matmul %24, %26, %cst_29 {dimension_numbers = #tpu.dot_dimension_numbers<[1], [0], [0], [1], [0, 0, 1, 1], [], []>} : vector<128x4xbf16>, vector<4x128xbf16>, vector<128x128xf32> -> vector<128x128xf32>
    %28 = arith.addf %21, %27 : vector<128x128xf32>
    %c0_30 = arith.constant 0 : index
    %c0_31 = arith.constant 0 : index
    %c1_32 = arith.constant 1 : index
    %c1_33 = arith.constant 1 : index
    %c0_34 = arith.constant 0 : index
    %29 = vector.load %arg2[%c0_30, %c0_31, %c1_32, %c1_33, %c0_34] : memref<1x1x10x18x4xbf16, #tpu.memory_space<vmem>>, vector<1x1x8x16x4xbf16>
    %30 = vector.shape_cast %29 : vector<1x1x8x16x4xbf16> to vector<8x16x4xbf16>
    %31 = vector.shape_cast %30 : vector<8x16x4xbf16> to vector<128x4xbf16>
    %c0_35 = arith.constant 0 : index
    %c16 = arith.constant 16 : index
    %c0_36 = arith.constant 0 : index
    %32 = vector.load %arg3[%c0_35, %c16, %c0_36] : memref<1x36x128xbf16, #tpu.memory_space<vmem>>, vector<1x4x128xbf16>
    %33 = vector.shape_cast %32 : vector<1x4x128xbf16> to vector<4x128xbf16>
    %cst_37 = arith.constant dense<0.000000e+00> : vector<128x128xf32>
    %34 = tpu.matmul %31, %33, %cst_37 {dimension_numbers = #tpu.dot_dimension_numbers<[1], [0], [0], [1], [0, 0, 1, 1], [], []>} : vector<128x4xbf16>, vector<4x128xbf16>, vector<128x128xf32> -> vector<128x128xf32>
    %35 = arith.addf %28, %34 : vector<128x128xf32>
    %c0_38 = arith.constant 0 : index
    %c0_39 = arith.constant 0 : index
    %c1_40 = arith.constant 1 : index
    %c2_41 = arith.constant 2 : index
    %c0_42 = arith.constant 0 : index
    %36 = vector.load %arg2[%c0_38, %c0_39, %c1_40, %c2_41, %c0_42] : memref<1x1x10x18x4xbf16, #tpu.memory_space<vmem>>, vector<1x1x8x16x4xbf16>
    %37 = vector.shape_cast %36 : vector<1x1x8x16x4xbf16> to vector<8x16x4xbf16>
    %38 = vector.shape_cast %37 : vector<8x16x4xbf16> to vector<128x4xbf16>
    %c0_43 = arith.constant 0 : index
    %c20 = arith.constant 20 : index
    %c0_44 = arith.constant 0 : index
    %39 = vector.load %arg3[%c0_43, %c20, %c0_44] : memref<1x36x128xbf16, #tpu.memory_space<vmem>>, vector<1x4x128xbf16>
    %40 = vector.shape_cast %39 : vector<1x4x128xbf16> to vector<4x128xbf16>
    %cst_45 = arith.constant dense<0.000000e+00> : vector<128x128xf32>
    %41 = tpu.matmul %38, %40, %cst_45 {dimension_numbers = #tpu.dot_dimension_numbers<[1], [0], [0], [1], [0, 0, 1, 1], [], []>} : vector<128x4xbf16>, vector<4x128xbf16>, vector<128x128xf32> -> vector<128x128xf32>
    %42 = arith.addf %35, %41 : vector<128x128xf32>
    %c0_46 = arith.constant 0 : index
    %c0_47 = arith.constant 0 : index
    %c2_48 = arith.constant 2 : index
    %c0_49 = arith.constant 0 : index
    %c0_50 = arith.constant 0 : index
    %43 = vector.load %arg2[%c0_46, %c0_47, %c2_48, %c0_49, %c0_50] : memref<1x1x10x18x4xbf16, #tpu.memory_space<vmem>>, vector<1x1x8x16x4xbf16>
    %44 = vector.shape_cast %43 : vector<1x1x8x16x4xbf16> to vector<8x16x4xbf16>
    %45 = vector.shape_cast %44 : vector<8x16x4xbf16> to vector<128x4xbf16>
    %c0_51 = arith.constant 0 : index
    %c24 = arith.constant 24 : index
    %c0_52 = arith.constant 0 : index
    %46 = vector.load %arg3[%c0_51, %c24, %c0_52] : memref<1x36x128xbf16, #tpu.memory_space<vmem>>, vector<1x4x128xbf16>
    %47 = vector.shape_cast %46 : vector<1x4x128xbf16> to vector<4x128xbf16>
    %cst_53 = arith.constant dense<0.000000e+00> : vector<128x128xf32>
    %48 = tpu.matmul %45, %47, %cst_53 {dimension_numbers = #tpu.dot_dimension_numbers<[1], [0], [0], [1], [0, 0, 1, 1], [], []>} : vector<128x4xbf16>, vector<4x128xbf16>, vector<128x128xf32> -> vector<128x128xf32>
    %49 = arith.addf %42, %48 : vector<128x128xf32>
    %c0_54 = arith.constant 0 : index
    %c0_55 = arith.constant 0 : index
    %c2_56 = arith.constant 2 : index
    %c1_57 = arith.constant 1 : index
    %c0_58 = arith.constant 0 : index
    %50 = vector.load %arg2[%c0_54, %c0_55, %c2_56, %c1_57, %c0_58] : memref<1x1x10x18x4xbf16, #tpu.memory_space<vmem>>, vector<1x1x8x16x4xbf16>
    %51 = vector.shape_cast %50 : vector<1x1x8x16x4xbf16> to vector<8x16x4xbf16>
    %52 = vector.shape_cast %51 : vector<8x16x4xbf16> to vector<128x4xbf16>
    %c0_59 = arith.constant 0 : index
    %c28 = arith.constant 28 : index
    %c0_60 = arith.constant 0 : index
    %53 = vector.load %arg3[%c0_59, %c28, %c0_60] : memref<1x36x128xbf16, #tpu.memory_space<vmem>>, vector<1x4x128xbf16>
    %54 = vector.shape_cast %53 : vector<1x4x128xbf16> to vector<4x128xbf16>
    %cst_61 = arith.constant dense<0.000000e+00> : vector<128x128xf32>
    %55 = tpu.matmul %52, %54, %cst_61 {dimension_numbers = #tpu.dot_dimension_numbers<[1], [0], [0], [1], [0, 0, 1, 1], [], []>} : vector<128x4xbf16>, vector<4x128xbf16>, vector<128x128xf32> -> vector<128x128xf32>
    %56 = arith.addf %49, %55 : vector<128x128xf32>
    %c0_62 = arith.constant 0 : index
    %c0_63 = arith.constant 0 : index
    %c2_64 = arith.constant 2 : index
    %c2_65 = arith.constant 2 : index
    %c0_66 = arith.constant 0 : index
    %57 = vector.load %arg2[%c0_62, %c0_63, %c2_64, %c2_65, %c0_66] : memref<1x1x10x18x4xbf16, #tpu.memory_space<vmem>>, vector<1x1x8x16x4xbf16>
    %58 = vector.shape_cast %57 : vector<1x1x8x16x4xbf16> to vector<8x16x4xbf16>
    %59 = vector.shape_cast %58 : vector<8x16x4xbf16> to vector<128x4xbf16>
    %c0_67 = arith.constant 0 : index
    %c32 = arith.constant 32 : index
    %c0_68 = arith.constant 0 : index
    %60 = vector.load %arg3[%c0_67, %c32, %c0_68] : memref<1x36x128xbf16, #tpu.memory_space<vmem>>, vector<1x4x128xbf16>
    %61 = vector.shape_cast %60 : vector<1x4x128xbf16> to vector<4x128xbf16>
    %cst_69 = arith.constant dense<0.000000e+00> : vector<128x128xf32>
    %62 = tpu.matmul %59, %61, %cst_69 {dimension_numbers = #tpu.dot_dimension_numbers<[1], [0], [0], [1], [0, 0, 1, 1], [], []>} : vector<128x4xbf16>, vector<4x128xbf16>, vector<128x128xf32> -> vector<128x128xf32>
    %63 = arith.addf %56, %62 : vector<128x128xf32>
    %64 = vector.shape_cast %63 : vector<128x128xf32> to vector<8x16x128xf32>
    %c0_70 = arith.constant 0 : index
    %c0_71 = arith.constant 0 : index
    %c0_72 = arith.constant 0 : index
    %65 = vector.load %arg4[%c0_70, %c0_71, %c0_72] : memref<1x8x16xf32, #tpu.memory_space<vmem>>, vector<1x8x16xf32>
    %66 = vector.shape_cast %65 : vector<1x8x16xf32> to vector<8x16xf32>
    %67 = vector.shape_cast %66 : vector<8x16xf32> to vector<8x16x1xf32>
    %68 = vector.broadcast %67 : vector<8x16x1xf32> to vector<8x16x128xf32>
    %69 = arith.addf %64, %68 : vector<8x16x128xf32>
    %c0_73 = arith.constant 0 : index
    %c0_74 = arith.constant 0 : index
    %70 = vector.load %arg5[%c0_73, %c0_74] : memref<1x128xf32, #tpu.memory_space<vmem>>, vector<1x128xf32>
    %71 = vector.shape_cast %70 : vector<1x128xf32> to vector<1x1x128xf32>
    %72 = vector.broadcast %71 : vector<1x1x128xf32> to vector<8x16x128xf32>
    %73 = arith.addf %69, %72 : vector<8x16x128xf32>
    %cst_75 = arith.constant 2.000000e-01 : f32
    %74 = vector.broadcast %cst_75 : f32 to vector<8x16x128xf32>
    %75 = arith.mulf %74, %73 : vector<8x16x128xf32>
    %76 = arith.maximumf %73, %75 : vector<8x16x128xf32>
    %77 = arith.truncf %76 : vector<8x16x128xf32> to vector<8x16x128xbf16>
    %c0_76 = arith.constant 0 : index
    %c0_77 = arith.constant 0 : index
    %c0_78 = arith.constant 0 : index
    %c0_79 = arith.constant 0 : index
    %78 = vector.load %arg6[%c0_76, %c0_77, %c0_78, %c0_79] : memref<1x8x16x128xbf16, #tpu.memory_space<vmem>>, vector<1x8x16x128xbf16>
    %79 = vector.shape_cast %78 : vector<1x8x16x128xbf16> to vector<8x16x128xbf16>
    %80 = vector.shape_cast %77 : vector<8x16x128xbf16> to vector<1x8x16x128xbf16>
    tpu.vector_store %arg6[%c0_76, %c0_77, %c0_78, %c0_79], %80 {strides = array<i32>} : memref<1x8x16x128xbf16, #tpu.memory_space<vmem>>, vector<1x8x16x128xbf16>,
    return
  }
  func.func @transform_0(%arg0: i32, %arg1: i32) -> (i32, i32, i32, i32, i32) {
    %c0_i32 = arith.constant 0 : i32
    %c0_i32_0 = arith.constant 0 : i32
    %c0_i32_1 = arith.constant 0 : i32
    %c0_i32_2 = arith.constant 0 : i32
    return %arg0, %arg1, %c0_i32, %c0_i32_0, %c0_i32_1 : i32, i32, i32, i32, i32
  }
  func.func @transform_1(%arg0: i32, %arg1: i32) -> (i32, i32, i32) {
    %c0_i32 = arith.constant 0 : i32
    %c0_i32_0 = arith.constant 0 : i32
    %c0_i32_1 = arith.constant 0 : i32
    return %arg0, %c0_i32, %c0_i32_0 : i32, i32, i32
  }
  func.func @transform_2(%arg0: i32, %arg1: i32) -> (i32, i32, i32) {
    %c0_i32 = arith.constant 0 : i32
    %c0_i32_0 = arith.constant 0 : i32
    return %arg0, %arg1, %c0_i32 : i32, i32, i32
  }
  func.func @transform_3(%arg0: i32, %arg1: i32) -> (i32, i32) {
    %c0_i32 = arith.constant 0 : i32
    %c0_i32_0 = arith.constant 0 : i32
    %c0_i32_1 = arith.constant 0 : i32
    return %c0_i32, %c0_i32_0 : i32, i32
  }
  func.func @transform_4(%arg0: i32, %arg1: i32) -> (i32, i32, i32, i32) {
    %c0_i32 = arith.constant 0 : i32
    %c0_i32_0 = arith.constant 0 : i32
    %c0_i32_1 = arith.constant 0 : i32
    return %arg0, %arg1, %c0_i32, %c0_i32_0 : i32, i32, i32, i32
  }
}

</mosaic_0001>

<bundles_post_ra>
// kernel: tpu_custom_call.1
= control target key start
LH: loop header
LB: loop body
LE: loop exit
PB: predicated region body
PF: predicated region fallthrough
CT: control target
= control target key end

     0   :  { %9 = vsyncpa [#allocation3], 0  ;;  %s5290_s0 = inlined_call_operand.vmem [shape: bf16[2,2,10,18,4], index: 0, kind: input, shape index: {}]   ;;  %s5291_s1 = inlined_call_operand.vmem [shape: bf16[2,36,128], index: 1, kind: input, shape index: {}]   ;;  %s5292_s2 = inlined_call_operand.vmem [shape: f32[2,16,16], index: 2, kind: input, shape index: {}]   ;;  %s5293_s3 = inlined_call_operand.vmem [shape: f32[1,128], index: 3, kind: input, shape index: {}]   ;;  %s5294_s4 = inlined_call_operand.hbm [shape: bf16[2,16,16,128], index: 4, kind: output, shape index: {}]  }
   0x1   :  { %11 = vsyncpa [#allocation3 + $0x1], 0  ;;  %s3959_s15 = smov 0   ;;  %s3961_s16 = smov 0  }
   0x2   :  { %s3963_s17 = smov 0   ;;  %s3965_s18 = smov 0  }
   0x3   :  { %s3967_s19 = smov 0   ;;  %s3969_s20 = smov 0  }
   0x4   :  { %s3971_s21 = smov 0   ;;  %s3973_s22 = smov 0  }
   0x5 LB: > { %s3112_s23 = sadd.s32 4294967295, %s3929_s22   ;;  %s3113_s24 = sadd.s32 4294967294, %s3929_s22   ;;  %s3929_s22 = sphi %s3973_s22, %s17_s22   ;;  %s3925_s21 = sphi %s3971_s21, %s5355_s21   ;;  %s3921_s20 = sphi %s3969_s20, %s5354_s20   ;;  %s3917_s19 = sphi %s3967_s19, %s5353_s19   ;;  %s3913_s18 = sphi %s3965_s18, %s5352_s18   ;;  %s3909_s17 = sphi %s3963_s17, %s5351_s17   ;;  %s3905_s16 = sphi %s3961_s16, %s5350_s16   ;;  %s3901_s15 = sphi %s3959_s15, %s5349_s15  }
   0x6   : > { %s26_s25 = sadd.s32 1, %s3921_s20  ;;  %s29_s26 = sadd.s32 1, %s3925_s21 }
   0x7   : > { %p27_p0 = scmp.ge.s32.totalorder %s26_s25, 2  ;;  %p151_p1 = scmp.ne.s32.totalorder %s3909_s17, %s3905_s16 }
   0x8   : > { %p152_p2 = scmp.eq.s32.totalorder %s3112_s23, 3  ;;  %p157_p5 = scmp.ne.s32.totalorder %s3905_s16, %s3901_s15 }
   0x9   : > { %s5357_s25 = smov (%p27_p0, %s26_s25), 0  ;;  %s5359_s26 = smov (!%p27_p0, %s29_s26), %s3925_s21 }
   0xa   : > { %s137_s27 = ssub.s32 %s3921_s20, %s5357_s25  ;;  %p4010_p3 = por %p152_p2, %p151_p1 }
   0xb   : > { %p31_p4 = scmp.ge.s32.totalorder %s5359_s26, 2  ;;  %p158_p6 = scmp.eq.s32.totalorder %s3113_s24, 3 }
   0xc   : > { %p3116_p7 = scmp.ge.s32.totalorder %s3929_s22, 1  ;;  %p210_p9 = scmp.lt.s32.totalorder %s3929_s22, 5 }
   0xd   : > { %s5361_s26 = smov (%p31_p4, %s5359_s26), 0  ;;  %p4019_p8 = por %p158_p6, %p157_p5 }
   0xe   : > { %s136_s30 = ssub.s32 %s3925_s21, %s5361_s26  ;;  %s141_s5 = sadd.s32 1, %s3909_s17 }
   0xf   : > { %s138_s6 = sor.u32 %s137_s27, %s136_s30  ;;  %p211_p10 = pnand %p3116_p7, %p210_p9 }
  0x10   : > { %p139_p11 = scmp.eq.s32.totalorder %s138_s6, 0 }
  0x11   : > { %214 = sbr.rel (%p211_p10) target bundleno = 430 (0x1ae), region = 36 }
  0x12   : > { %s4028_s7 = scalar_select %p139_p11, %s3909_s17, %s141_s5  }
  0x16   : > { %p253_p12 = scmp.lt.s32.totalorder %s3917_s19, 1  ;;  %p255_p13 = scmp.lt.s32.totalorder %s3913_s18, 1  ;;  %vm302_vm0 = vsmask.f32 3328  ;;  %vm303_vm1 = vsmask.f32 7440 }
  0x17   : > { %vm551_vm2 = vcmask 1041408   ;;  %vm4090_vm3 = vmor %vm302_vm0, %vm303_vm1  ;;  %vm526_vm4 = vcmask 31744   ;;  %vm840_vm5 = vcmask 1042432   ;;  %vm841_vm6 = vcmask 1046532   ;;  %s250_s24 = sand.u32 1, %s3905_s16   ;;  %s3430_s5 = sshll.u32 %s3913_s18, 4 }
  0x18   : > { %s4033_s8 = scalar_select %p253_p12, %s3917_s19, 1  ;;  %vm4223_vm7 = vmor %vm840_vm5, %vm841_vm6 }
  0x19   : > { %s4036_s9 = scalar_select %p255_p13, %s3913_s18, 1 }
  0x1a   : > { %s3734_s10 = smul.u32 60, %s4033_s8 }
  0x1b   : > { %s3733_s11 = smul.u32 30, %s4036_s9 }
  0x1c   : > { %s3735_s12 = smul.u32 20, %s4033_s8 }
  0x1d   : > { %s259_s13 = sadd.s32 %s3734_s10, %s3733_s11  ;;  %s3120_s10 = sshll.u32 %s4033_s8, 1 }
  0x1e   : > { %s3118_s14 = sshll.u32 %s259_s13, 2  ;;  %s4044_s27 = scalar_lea.vmem %s5291_s1, %s3735_s12 }
  0x1f   : > { %s4049_s6 = scalar_lea.vmem %s5290_s0, %s3118_s14  ;;  %v3809_v0 = vld [vmem:[%s4044_s27] ss:$0 sps:$4 sm:$0xcc]   ;;  %v899_v45 = vld [vmem:[%s4044_s27 + $0x4] sm:$0x3]  ;;  %s4310_s11 = sadd.s32 %s3120_s10, %s4036_s9 }
  0x20   : > { %v4053_v1 = vld [vmem:[%s4049_s6] sm:$0xf]  ;;  %v4056_v2 = vld [vmem:[%s4049_s6 + $0x4] sm:$0xf]  ;;  %v4059_v3 = vld [vmem:[%s4049_s6 + $0x8] sm:$0x1] }
  0x21   : > { %v525_v4 = vrot.slane %v3809_v0, 2  ;;  %v306_v5 = vshrl.u32 %v4053_v1, 16  ;;  %v309_v6 = vshll.u32 %v4053_v1, 16  ;;  %v315_v7 = vshll.u32 %v4056_v2, 16  ;;  %v4065_v8 = vld [vmem:[%s4049_s6 + $0x30] sm:$0xf] }
  0x22   : > { %v319_v9 = vshrl.u32 %v4056_v2, 16  ;;  %v325_v10 = vshll.u32 %v4059_v3, 16  ;;  %v4070_v11 = vld [vmem:[%s4049_s6 + $0x34] sm:$0xf]  ;;  %v402_v12 = vshrl.u32 %v4065_v8, 16  ;;  %v405_v20 = vshll.u32 %v4065_v8, 16 }
  0x23   : > { %3724 = vmatprep.subr.msk.bf16.mxu1 %vm551_vm2, %v525_v4  ;;  %3723 = vmatprep.subr.msk.bf16.mxu0 %vm551_vm2, %v525_v4  ;;  %v553_v13 = vsel %vm551_vm2, %v525_v4, 0  ;;  %v308_v14 = vrot.slane %v306_v5, 4  ;;  %v311_v15 = vrot.slane %v309_v6, 5  ;;  %v317_v16 = vrot.slane %v315_v7, 5  ;;  %v4077_v17 = vld [vmem:[%s4049_s6 + $0x38] sm:$0x1] }
  0x24   : > { %3722 = vmatpush3.bf16.msra.mxu1 %v553_v13  ;;  %3560 = vmatpush3.bf16.msra.mxu0 %v553_v13  ;;  %v321_v18 = vrot.slane %v319_v9, 4  ;;  %v404_v19 = vrot.slane %v402_v12, 4  ;;  %v293_v21 = vld [vmem:[%s4044_s27] sm:$0x3]  ;;  %v411_v23 = vshll.u32 %v4070_v11, 16  ;;  %v415_v24 = vshrl.u32 %v4070_v11, 16 }
  0x25   : > { %v312_v22 = vor.u32 %v311_v15, %v308_v14  ;;  %v421_v25 = vshll.u32 %v4077_v17, 16  ;;  %3725 = vmatprep.subr.msk.bf16.mxu1 %vm551_vm2, %v293_v21  ;;  %v4086_v26 = vld [vmem:[%s4049_s6 + $0xc] sm:$0xf]  ;;  %v327_v29 = vrot.slane %v325_v10, 5  ;;  %v407_v30 = vrot.slane %v405_v20, 5  ;;  %3726 = vmatprep.subr.msk.bf16.mxu0 %vm551_vm2, %v899_v45  ;;  %s3121_s8 = sshll.u32 %s4310_s11, 3 }
  0x26   : > { %v322_v28 = vor.u32 %v321_v18, %v317_v16  ;;  %v4095_v31 = vld [vmem:[%s4049_s6 + $0x10] sm:$0xf]  ;;  %v413_v33 = vrot.slane %v411_v23, 5  ;;  %v417_v34 = vrot.slane %v415_v24, 4  ;;  %v330_v38 = vshrl.u32 %v4086_v26, 16  ;;  %s274_s13 = scalar_lea.vmem %s5292_s2, %s3121_s8  ;;  %s5239_s12 = scalar_lea.sflag [#allocation3], %s250_s24 }
  0x27   : > { %v313_v32 = vrot.slane %v312_v22, 4  ;;  %v423_v35 = vrot.slane %v421_v25, 5  ;;  %v408_v37 = vor.u32 %v407_v30, %v404_v19  ;;  %v333_v39 = vshll.u32 %v4086_v26, 16  ;;  %v4102_v42 = vld [vmem:[%s4049_s6 + $0x14] sm:$0x1]  ;;  %s3931_s14 = smov [#allocation2]  }
  0x28   : > { %v323_v36 = vrot.slane %v322_v28, 4  ;;  %v418_v41 = vor.u32 %v417_v34, %v413_v33  ;;  %v339_v43 = vshll.u32 %v4095_v31, 16  ;;  %v343_v44 = vshrl.u32 %v4095_v31, 16  ;;  %v4110_v50 = vld [vmem:[%s4049_s6 + $0x3c] sm:$0xf]  ;;  %s3841_s23 = sshll.u32 %s3931_s14, 4  ;;  %s3842_s23 = int_to_ptr.vmem [resolvable:$false] %s3841_s23 }
  0x29   : > { %v318_v40 = vsel %vm4090_vm3, %v313_v32, %v317_v16  ;;  %v409_v47 = vrot.slane %v408_v37, 4  ;;  %v332_v48 = vrot.slane %v330_v38, 4  ;;  %v335_v49 = vrot.slane %v333_v39, 5  ;;  %v4118_v59 = vld [vmem:[%s4049_s6 + $0x40] sm:$0xf] }
  0x2a   : > { %v328_v46 = vsel %vm4090_vm3, %v323_v36, %v327_v29  ;;  %v419_v52 = vrot.slane %v418_v41, 4  ;;  %v341_v53 = vrot.slane %v339_v43, 5  ;;  %v345_v54 = vrot.slane %v343_v44, 4  ;;  %v4125_v63 = vld [vmem:[%s4049_s6 + $0x44] sm:$0x1] }
  0x2b   : > { %v3122_v51 = vcombine.low %v318_v40, %v328_v46  ;;  %v848_v55 = vrot.slane %v4059_v3, 5  ;;  %v414_v56 = vsel %vm4090_vm3, %v409_v47, %v413_v33  ;;  %v336_v57 = vor.u32 %v335_v49, %v332_v48  ;;  %v4130_v9 = vld [vmem:[%s4049_s6 + $0x18] sm:$0xf]  ;;  %v4135_v15 = vld [vmem:[%s4049_s6 + $0x1c] sm:$0xf] }
  0x2c   : > { %v349_v58 = vshll.u32 %v4102_v42, 16  ;;  %v424_v60 = vsel %vm4090_vm3, %v419_v52, %v423_v35  ;;  %v346_v61 = vor.u32 %v345_v54, %v341_v53  ;;  %v852_v62 = vrot.slane %v4095_v31, 5  ;;  %v4143_v22 = vld [vmem:[%s4049_s6 + $0x20] sm:$0x1]  ;;  %v4149_v29 = vld [vmem:[%s4049_s6 + $0x48] sm:$0xf] }
  0x2d   : > { %3561 = vmatprep.mubr.msk.bf16.mxu0 %vm526_vm4, %v3122_v51  ;;  %v426_v0 = vshrl.u32 %v4110_v50, 16  ;;  %v3126_v4 = vcombine.low %v414_v56, %v424_v60  ;;  %v337_v5 = vrot.slane %v336_v57, 4  ;;  %v429_v7 = vshll.u32 %v4110_v50, 16  ;;  %v4156_v38 = vld [vmem:[%s4049_s6 + $0x4c] sm:$0xf] }
  0x2e   : > { %v351_v6 = vrot.slane %v349_v58, 5  ;;  %v347_v10 = vrot.slane %v346_v61, 4  ;;  %v435_v13 = vshll.u32 %v4118_v59, 16  ;;  %v439_v14 = vshrl.u32 %v4118_v59, 16  ;;  %v4162_v48 = vld [vmem:[%s4049_s6 + $0x50] sm:$0x1] }
  0x2f   : > { %v428_v12 = vrot.slane %v426_v0, 4  ;;  %3569 = vmatprep.mubr.msk.bf16.mxu1 %vm526_vm4, %v3126_v4  ;;  %v342_v16 = vsel %vm4090_vm3, %v337_v5, %v341_v53  ;;  %v431_v18 = vrot.slane %v429_v7, 5  ;;  %v445_v19 = vshll.u32 %v4125_v63, 16  ;;  %v4168_v54 = vld [vmem:[%s4049_s6 + $0x24] sm:$0xf] }
  0x30   : > { %v717_v20 = vsel %vm551_vm2, %v293_v21, 0  ;;  %v352_v23 = vsel %vm4090_vm3, %v347_v10, %v351_v6  ;;  %v437_v24 = vrot.slane %v435_v13, 5  ;;  %v441_v25 = vrot.slane %v439_v14, 4  ;;  %v4174_v61 = vld [vmem:[%s4044_s27 + $0x8] sm:$0x3] }
  0x31   : > { %v949_v28 = vsel %vm551_vm2, %v899_v45, 0  ;;  %v3123_v30 = vcombine.low %v342_v16, %v352_v23  ;;  %v432_v32 = vor.u32 %v431_v18, %v428_v12  ;;  %v447_v33 = vrot.slane %v445_v19, 5  ;;  %v4179_v7 = vld [vmem:[%s4049_s6 + $0x28] sm:$0xf]  ;;  %v4184_v14 = vld [vmem:[%s4049_s6 + $0x2c] sm:$0x1] }
  0x32   : > { %v354_v34 = vshrl.u32 %v4130_v9, 16  ;;  %v442_v35 = vor.u32 %v441_v25, %v437_v24  ;;  %v357_v21 = vshll.u32 %v4130_v9, 16  ;;  %v363_v36 = vshll.u32 %v4135_v15, 16  ;;  %v4190_v25 = vld [vmem:[%s4049_s6 + $0x54] sm:$0xf] }
  0x33   : > { %v367_v37 = vshrl.u32 %v4135_v15, 16  ;;  %3562 = vmatmul.mubr.msk.bf16.vlgmr.msra.gmra.mxu0 %vm526_vm4, %v3123_v30  ;;  %v433_v39 = vrot.slane %v432_v32, 4  ;;  %v373_v41 = vshll.u32 %v4143_v22, 16  ;;  %v450_v43 = vshrl.u32 %v4149_v29, 16  ;;  %v821_v3 = vld [vmem:[%s4049_s6 + $0x3c] sm:$0xe] }
  0x34   : > { %v356_v40 = vrot.slane %v354_v34, 4  ;;  %v443_v44 = vrot.slane %v442_v35, 4  ;;  %3596 = vmatpush3.bf16.msra.mxu0 %v949_v28  ;;  %v359_v45 = vrot.slane %v357_v21, 5  ;;  %v365_v46 = vrot.slane %v363_v36, 5  ;;  %v4198_v34 = vld [vmem:[%s4049_s6 + $0x58] sm:$0xf] }
  0x35   : > { %v369_v47 = vrot.slane %v367_v37, 4  ;;  %v438_v49 = vsel %vm4090_vm3, %v433_v39, %v437_v24  ;;  %v375_v51 = vrot.slane %v373_v41, 5  ;;  %v452_v52 = vrot.slane %v450_v43, 4  ;;  %3728 = vmatprep.subr.msk.bf16.mxu0 %vm551_vm2, %v4174_v61  ;;  %v4201_v39 = vld [vmem:[%s4049_s6 + $0x5c] sm:$0x1] }
  0x36   : > { %v453_v53 = vshll.u32 %v4149_v29, 16  ;;  %v448_v56 = vsel %vm4090_vm3, %v443_v44, %v447_v33  ;;  %v360_v57 = vor.u32 %v359_v45, %v356_v40  ;;  %v459_v60 = vshll.u32 %v4156_v38, 16  ;;  %v816_v44 = vld [vmem:[%s4049_s6] sm:$0xe] }
  0x37   : > { %v370_v58 = vor.u32 %v369_v47, %v365_v46  ;;  %v3127_v0 = vcombine.low %v438_v49, %v448_v56  ;;  %v463_v5 = vshrl.u32 %v4156_v38, 16  ;;  %v469_v6 = vshll.u32 %v4162_v48, 16 }
  0x38   : > { %v455_v4 = vrot.slane %v453_v53, 5  ;;  %v361_v10 = vrot.slane %v360_v57, 4  ;;  %v461_v13 = vrot.slane %v459_v60, 5  ;;  %v378_v16 = vshrl.u32 %v4168_v54, 16 }
  0x39   : > { %v371_v12 = vrot.slane %v370_v58, 4  ;;  %3570 = vmatmul.mubr.msk.bf16.vlgmr.msra.gmra.mxu1 %vm526_vm4, %v3127_v0  ;;  %v465_v19 = vrot.slane %v463_v5, 4  ;;  %v471_v23 = vrot.slane %v469_v6, 5  ;;  %v381_v24 = vshll.u32 %v4168_v54, 16  ;;  %v817_v5 = vld [vmem:[%s4049_s6 + $0xc] sm:$0xe] }
  0x3a   : > { %v456_v18 = vor.u32 %v455_v4, %v452_v52  ;;  %3578 = vmatpush3.bf16.msra.mxu1 %v717_v20  ;;  %v366_v28 = vsel %vm4090_vm3, %v361_v10, %v365_v46  ;;  %v380_v32 = vrot.slane %v378_v16, 4  ;;  %v387_v33 = vshll.u32 %v4179_v7, 16 }
  0x3b   : > { %v376_v30 = vsel %vm4090_vm3, %v371_v12, %v375_v51  ;;  %v466_v36 = vor.u32 %v465_v19, %v461_v13  ;;  %v383_v37 = vrot.slane %v381_v24, 5  ;;  %v391_v20 = vshrl.u32 %v4179_v7, 16  ;;  %v4212_v51 = vld [vmem:[%s4044_s27 + $0x4] ss:$0 sps:$4 sm:$0xcc]  }
  0x3c   : > { %v3124_v35 = vcombine.low %v366_v28, %v376_v30  ;;  %v457_v21 = vrot.slane %v456_v18, 4  ;;  %v389_v40 = vrot.slane %v387_v33, 5  ;;  %v397_v41 = vshll.u32 %v4184_v14, 16 }
  0x3d   : > { %v474_v43 = vshrl.u32 %v4190_v25, 16  ;;  %v467_v46 = vrot.slane %v466_v36, 4  ;;  %v384_v47 = vor.u32 %v383_v37, %v380_v32  ;;  %v477_v49 = vshll.u32 %v4190_v25, 16 }
  0x3e   : > { %3565 = vmatprep.mubr.msk.bf16.mxu0 %vm526_vm4, %v3124_v35  ;;  %v462_v45 = vsel %vm4090_vm3, %v457_v21, %v461_v13  ;;  %v393_v52 = vrot.slane %v391_v20, 4  ;;  %v399_v53 = vrot.slane %v397_v41, 5  ;;  %v483_v57 = vshll.u32 %v4198_v34, 16 }
  0x3f   : > { %v476_v56 = vrot.slane %v474_v43, 4  ;;  %v472_v58 = vsel %vm4090_vm3, %v467_v46, %v471_v23  ;;  %v385_v60 = vrot.slane %v384_v47, 4  ;;  %v479_v0 = vrot.slane %v477_v49, 5  ;;  %v818_v46 = vld [vmem:[%s4049_s6 + $0x18] sm:$0xe] }
  0x40   : > { %v487_v4 = vshrl.u32 %v4198_v34, 16  ;;  %v3128_v6 = vcombine.low %v462_v45, %v472_v58  ;;  %v394_v10 = vor.u32 %v393_v52, %v389_v40  ;;  %v485_v12 = vrot.slane %v483_v57, 5  ;;  %v819_v52 = vld [vmem:[%s4049_s6 + $0x24] sm:$0xe] }
  0x41   : > { %v493_v13 = vshll.u32 %v4201_v39, 16  ;;  %v855_v16 = vrot.slane %v4102_v42, 5  ;;  %v480_v18 = vor.u32 %v479_v0, %v476_v56  ;;  %v3155_v23 = vrot.slane %v816_v44, 9 }
  0x42   : > { %v489_v19 = vrot.slane %v487_v4, 4  ;;  %3573 = vmatprep.mubr.msk.bf16.mxu1 %vm526_vm4, %v3128_v6  ;;  %v390_v28 = vsel %vm4090_vm3, %v385_v60, %v389_v40  ;;  %v395_v30 = vrot.slane %v394_v10, 4  ;;  %v845_v32 = vrot.slane %v4056_v2, 5 }
  0x43   : > { %v1125_v42 = vrot.slane %v4212_v51, 2  ;;  %v481_v33 = vrot.slane %v480_v18, 4  ;;  %v495_v21 = vrot.slane %v493_v13, 5  ;;  %v3156_v36 = vrot.slane %v817_v5, 9 }
  0x44   : > { %v490_v35 = vor.u32 %v489_v19, %v485_v12  ;;  %v400_v37 = vsel %vm4090_vm3, %v395_v30, %v399_v53  ;;  %v846_v20 = vsel %vm4223_vm7, %v3155_v23, %v845_v32  ;;  %v847_v41 = vrot.slane %v845_v32, 4 }
  0x45   : > { %3727 = vmatprep.subr.msk.bf16.mxu1 %vm551_vm2, %v1125_v42  ;;  %v854_v40 = vrot.slane %v852_v62, 4  ;;  %v3125_v43 = vcombine.low %v390_v28, %v400_v37  ;;  %v486_v44 = vsel %vm4090_vm3, %v481_v33, %v485_v12  ;;  %v3139_v47 = vcombine.low %v4053_v1, %v4056_v2  ;;  %v820_v2 = vld [vmem:[%s4049_s6 + $0x30] sm:$0xe]  ;;  %v822_v28 = vld [vmem:[%s4049_s6 + $0x48] sm:$0xe] }
  0x46   : > { %v491_v45 = vrot.slane %v490_v35, 4  ;;  %v849_v49 = vsel %vm4223_vm7, %v847_v41, %v848_v55  ;;  %v853_v57 = vsel %vm4223_vm7, %v3156_v36, %v852_v62  ;;  %v3157_v60 = vrot.slane %v818_v46, 9  ;;  %v3212_v35 = vld [vmem:[%s4049_s6 + $0xc] sm:$0xf] }
  0x47   : > { %3566 = vmatmul.mubr.msk.bf16.gmra.mxu0 %vm526_vm4, %v3125_v43  ;;  %v3163_v56 = vcombine.low %v846_v20, %v849_v49  ;;  %v856_v1 = vsel %vm4223_vm7, %v854_v40, %v855_v16  ;;  %v859_v55 = vrot.slane %v4135_v15, 5  ;;  %v862_v0 = vrot.slane %v4143_v22, 5  ;;  %v823_v20 = vld [vmem:[%s4049_s6 + $0x54] sm:$0xe]  ;;  %v4301_v41 = vld [vmem:[%s4044_s27 + $0xc] sm:$0x3] }
  0x48   : > { %v496_v53 = vsel %vm4090_vm3, %v491_v45, %v495_v21  ;;  %v876_v4 = vrot.slane %v4077_v17, 5  ;;  %v3158_v5 = vrot.slane %v819_v52, 9  ;;  %v866_v6 = vrot.slane %v4179_v7, 5 }
  0x49   : > { %v3129_v58 = vcombine.low %v486_v44, %v496_v53  ;;  %3597 = vmatprep.mubr.msk.bf16.mxu0 %vm526_vm4, %v3163_v56  ;;  %v869_v62 = vrot.slane %v4184_v14, 5  ;;  %v3140_v10 = vcombine.low %v4086_v26, %v4095_v31  ;;  %v860_v12 = vsel %vm4223_vm7, %v3157_v60, %v859_v55  ;;  %v4326_v53 = vld [vmem:[%s4044_s27 + $0x8] ss:$0 sps:$4 sm:$0xcc]  }
  0x4a   : > { %v861_v13 = vrot.slane %v859_v55, 4  ;;  %v3159_v22 = vrot.slane %v820_v2, 9  ;;  %v3164_v17 = vcombine.low %v853_v57, %v856_v1  ;;  %v1532_v16 = vsel %vm551_vm2, %v4174_v61, 0 }
  0x4b   : > { %3574 = vmatmul.mubr.msk.bf16.gmra.mxu1 %vm526_vm4, %v3129_v58  ;;  %v868_v18 = vrot.slane %v866_v6, 4  ;;  %v873_v14 = vrot.slane %v4070_v11, 5  ;;  %v3141_v26 = vcombine.low %v4130_v9, %v4135_v15  ;;  %v3160_v19 = vrot.slane %v821_v3, 9  ;;  %v4289_v9 = vld [vmem:[%s4049_s6 + $0x10] sm:$0xf] }
  0x4c   : > { %3579 = vmatprep.mubr.msk.bf16.mxu1 %vm526_vm4, %v3139_v47  ;;  %v863_v31 = vsel %vm4223_vm7, %v861_v13, %v862_v0  ;;  %v880_v23 = vrot.slane %v4118_v59, 5  ;;  %v867_v61 = vsel %vm4223_vm7, %v3158_v5, %v866_v6  ;;  %v3142_v15 = vcombine.low %v4168_v54, %v4179_v7 }
  0x4d   : > { %v3165_v30 = vcombine.low %v860_v12, %v863_v31  ;;  %v870_v32 = vsel %vm4223_vm7, %v868_v18, %v869_v62  ;;  %v875_v33 = vrot.slane %v873_v14, 4  ;;  %v3143_v21 = vcombine.low %v4065_v8, %v4070_v11  ;;  %v4343_v12 = vld [vmem:[%s4049_s6 + $0x1c] sm:$0xf]  ;;  %v4350_v18 = vld [vmem:[%s4049_s6 + $0x20] sm:$0x1] }
  0x4e   : > { %v874_v36 = vsel %vm4223_vm7, %v3159_v22, %v873_v14  ;;  %v3144_v37 = vcombine.low %v4110_v50, %v4118_v59  ;;  %v882_v43 = vrot.slane %v880_v23, 4  ;;  %v883_v44 = vrot.slane %v4125_v63, 5  ;;  %v4323_v63 = vld [vmem:[%s4049_s6 + $0x14] sm:$0x1] }
  0x4f   : > { %3598 = vmatmul.mubr.msk.bf16.vlgmr.msra.gmra.mxu0 %vm526_vm4, %v3164_v17  ;;  %v877_v40 = vsel %vm4223_vm7, %v875_v33, %v876_v4  ;;  %v887_v45 = vrot.slane %v4156_v38, 5  ;;  %v1151_v46 = vsel %vm551_vm2, %v1125_v42, 0  ;;  %v3166_v47 = vcombine.low %v867_v61, %v870_v32  ;;  %v3215_v4 = vld [vmem:[%s4049_s6 + $0x18] sm:$0xf]  ;;  %v3218_v61 = vld [vmem:[%s4049_s6 + $0x24] sm:$0xf] }
  0x50   : > { %3632 = vmatpush3.bf16.msra.mxu0 %v1532_v16  ;;  %3601 = vmatprep.mubr.msk.bf16.mxu0 %vm526_vm4, %v3165_v30  ;;  %v4318_v49 = vsel %vm4223_vm7, %v3160_v19, %v880_v23  ;;  %v3145_v52 = vcombine.low %v4149_v29, %v4156_v38  ;;  %v3167_v56 = vcombine.low %v874_v36, %v877_v40  ;;  %v3161_v51 = vrot.slane %v822_v28, 9  ;;  %v4400_v11 = vld [vmem:[%s4049_s6 + $0x34] sm:$0xf] }
  0x51   : > { %v890_v42 = vrot.slane %v4162_v48, 5  ;;  %v894_v57 = vrot.slane %v4198_v34, 5  ;;  %3730 = vmatprep.subr.msk.bf16.mxu0 %vm551_vm2, %v4301_v41  ;;  %v889_v1 = vrot.slane %v887_v45, 4  ;;  %v1291_v2 = vshrl.u32 %v3212_v35, 16 }
  0x52   : > { %v1294_v3 = vshll.u32 %v3212_v35, 16  ;;  %v1300_v58 = vshll.u32 %v4289_v9, 16  ;;  %v4337_v48 = vsel %vm4223_vm7, %v882_v43, %v883_v44  ;;  %v3162_v60 = vrot.slane %v823_v20, 9  ;;  %v4371_v20 = vld [vmem:[%s4049_s6 + $0x28] sm:$0xf] }
  0x53   : > { %3580 = vmatmul.mubr.msk.bf16.vlgmr.msra.gmra.mxu1 %vm526_vm4, %v3140_v10  ;;  %v897_v55 = vrot.slane %v4201_v39, 5  ;;  %v1304_v0 = vshrl.u32 %v4289_v9, 16  ;;  %v896_v5 = vrot.slane %v894_v57, 4  ;;  %v1293_v6 = vrot.slane %v1291_v2, 4 }
  0x54   : > { %3614 = vmatpush3.bf16.msra.mxu1 %v1151_v46  ;;  %3583 = vmatprep.mubr.msk.bf16.mxu1 %vm526_vm4, %v3141_v26  ;;  %v1296_v62 = vrot.slane %v1294_v3, 5  ;;  %v1302_v10 = vrot.slane %v1300_v58, 5  ;;  %v888_v13 = vsel %vm4223_vm7, %v3161_v51, %v887_v45  ;;  %v1310_v17 = vshll.u32 %v4323_v63, 16 }
  0x55   : > { %v1306_v22 = vrot.slane %v1304_v0, 4  ;;  %v1763_v16 = vrot.slane %v4326_v53, 2  ;;  %v891_v39 = vsel %vm4223_vm7, %v889_v1, %v890_v42  ;;  %v1315_v26 = vshrl.u32 %v3215_v4, 16  ;;  %v4385_v42 = vld [vmem:[%s4049_s6 + $0x2c] sm:$0x1] }
  0x56   : > { %v1297_v14 = vor.u32 %v1296_v62, %v1293_v6  ;;  %v1318_v31 = vshll.u32 %v3215_v4, 16  ;;  %v4357_v19 = vsel %vm4223_vm7, %v3162_v60, %v894_v57  ;;  %v1324_v28 = vshll.u32 %v4343_v12, 16  ;;  %v3221_v57 = vld [vmem:[%s4049_s6 + $0x30] sm:$0xf]  ;;  %v4407_v6 = vld [vmem:[%s4049_s6 + $0x38] sm:$0x1] }
  0x57   : > { %3602 = vmatmul.mubr.msk.bf16.gmra.mxu0 %vm526_vm4, %v3166_v47  ;;  %v1307_v23 = vor.u32 %v1306_v22, %v1302_v10  ;;  %3729 = vmatprep.subr.msk.bf16.mxu1 %vm551_vm2, %v1763_v16  ;;  %v1328_v30 = vshrl.u32 %v4343_v12, 16  ;;  %v4368_v32 = vsel %vm4223_vm7, %v896_v5, %v897_v55  ;;  %v1317_v35 = vrot.slane %v1315_v26, 4  ;;  %v3224_v55 = vld [vmem:[%s4049_s6 + $0x3c] sm:$0xf]  ;;  %v4490_v53 = vld [vmem:[%s4044_s27 + $0x10] sm:$0x3] }
  0x58   : > { %3605 = vmatprep.mubr.msk.bf16.mxu0 %vm526_vm4, %v3167_v56  ;;  %v1298_v33 = vrot.slane %v1297_v14, 4  ;;  %v1320_v36 = vrot.slane %v1318_v31, 5  ;;  %v1312_v43 = vrot.slane %v1310_v17, 5  ;;  %v4373_v44 = vrot.slane %v1324_v28, 5 }
  0x59   : > { %v1308_v40 = vrot.slane %v1307_v23, 4  ;;  %v1330_v45 = vrot.slane %v1328_v30, 4  ;;  %v3168_v46 = vcombine.low %v4318_v49, %v4337_v48  ;;  %v3169_v47 = vcombine.low %v888_v13, %v891_v39 }
  0x5a   : > { %v3146_v56 = vcombine.low %v4190_v25, %v4198_v34  ;;  %v1334_v51 = vshll.u32 %v4350_v18, 16  ;;  %v1321_v54 = vor.u32 %v1320_v36, %v1317_v35  ;;  %v1342_v49 = vshll.u32 %v3218_v61, 16  ;;  %v4470_v25 = vld [vmem:[%s4049_s6 + $0x5c] sm:$0x1] }
  0x5b   : > { %3584 = vmatmul.mubr.msk.bf16.gmra.mxu1 %vm526_vm4, %v3142_v15  ;;  %v1331_v7 = vor.u32 %v1330_v45, %v4373_v44  ;;  %v1339_v15 = vshrl.u32 %v3218_v61, 16  ;;  %v3170_v1 = vcombine.low %v4357_v19, %v4368_v32  ;;  %v1303_v2 = vsel %vm4090_vm3, %v1298_v33, %v1302_v10  ;;  %v4413_v19 = vld [vmem:[%s4049_s6 + $0x40] sm:$0xf]  ;;  %v4417_v32 = vld [vmem:[%s4049_s6 + $0x44] sm:$0x1] }
  0x5c   : > { %3587 = vmatprep.mubr.msk.bf16.mxu1 %vm526_vm4, %v3143_v21  ;;  %v1348_v3 = vshll.u32 %v4371_v20, 16  ;;  %v1352_v8 = vshrl.u32 %v4371_v20, 16  ;;  %v1313_v21 = vsel %vm4090_vm3, %v1308_v40, %v1312_v43  ;;  %v1344_v48 = vrot.slane %v1342_v49, 5  ;;  %v3227_v45 = vld [vmem:[%s4049_s6 + $0x48] sm:$0xf] }
  0x5d   : > { %v1341_v58 = vrot.slane %v1339_v15, 4  ;;  %v1358_v60 = vshll.u32 %v4385_v42, 16  ;;  %v1336_v0 = vrot.slane %v1334_v51, 5  ;;  %v1363_v62 = vshrl.u32 %v3221_v57, 16 }
  0x5e   : > { %v1350_v4 = vrot.slane %v1348_v3, 5  ;;  %v1354_v5 = vrot.slane %v1352_v8, 4  ;;  %v1322_v10 = vrot.slane %v1321_v54, 4  ;;  %v1332_v13 = vrot.slane %v1331_v7, 4  ;;  %v4444_v7 = vld [vmem:[%s4049_s6 + $0x4c] sm:$0xf] }
  0x5f   : > { %3606 = vmatmul.mubr.msk.bf16.gmra.mxu0 %vm526_vm4, %v3168_v46  ;;  %v1345_v22 = vor.u32 %v1344_v48, %v1341_v58  ;;  %v1366_v17 = vshll.u32 %v3221_v57, 16  ;;  %v3236_v39 = vcombine.low %v1303_v2, %v1313_v21  ;;  %v1360_v26 = vrot.slane %v1358_v60, 5  ;;  %v3819_v3 = vld [vmem:[%s4049_s6 + $0xc] sm:$0xff]  }
  0x60   : > { %3609 = vmatprep.mubr.msk.bf16.mxu0 %vm526_vm4, %v3169_v47  ;;  %v1355_v14 = vor.u32 %v1354_v5, %v1350_v4  ;;  %v1372_v31 = vshll.u32 %v4400_v11, 16  ;;  %v1365_v28 = vrot.slane %v1363_v62, 4  ;;  %v1376_v61 = vshrl.u32 %v4400_v11, 16 }
  0x61   : > { %v1346_v23 = vrot.slane %v1345_v22, 4  ;;  %v1368_v30 = vrot.slane %v1366_v17, 5  ;;  %v1387_v36 = vshrl.u32 %v3224_v55, 16  ;;  %v1390_v40 = vshll.u32 %v3224_v55, 16  ;;  %v3230_v55 = vld [vmem:[%s4049_s6 + $0x54] sm:$0xf] }
  0x62   : > { %v1356_v33 = vrot.slane %v1355_v14, 4  ;;  %v4423_v35 = vrot.slane %v1372_v31, 5  ;;  %v1327_v43 = vsel %vm4090_vm3, %v1322_v10, %v4373_v44  ;;  %v1337_v50 = vsel %vm4090_vm3, %v1332_v13, %v1336_v0  ;;  %v4457_v10 = vld [vmem:[%s4049_s6 + $0x58] sm:$0xf] }
  0x63   : > { %3588 = vmatmul.mubr.msk.bf16.gmra.mxu1 %vm526_vm4, %v3144_v37  ;;  %v1378_v59 = vrot.slane %v1376_v61, 4  ;;  %v1382_v37 = vshll.u32 %v4407_v6, 16  ;;  %v1351_v46 = vsel %vm4090_vm3, %v1346_v23, %v1350_v4  ;;  %v1389_v47 = vrot.slane %v1387_v36, 4  ;;  %v3233_v61 = vld [vmem:[%s4049_s6 + $0x60] sm:$0xf] }
  0x64   : > { %3591 = vmatprep.mubr.msk.bf16.mxu1 %vm526_vm4, %v3145_v52  ;;  %v1392_v51 = vrot.slane %v1390_v40, 5  ;;  %v1396_v29 = vshll.u32 %v4413_v19, 16  ;;  %v1361_v38 = vsel %vm4090_vm3, %v1356_v33, %v1360_v26  ;;  %v1369_v52 = vor.u32 %v1368_v30, %v1365_v28 }
  0x65   : > { %v1379_v44 = vor.u32 %v1378_v59, %v4423_v35  ;;  %v1400_v54 = vshrl.u32 %v4413_v19, 16  ;;  %v1406_v57 = vshll.u32 %v4417_v32, 16  ;;  %v1411_v2 = vshrl.u32 %v3227_v45, 16  ;;  %v3821_v59 = vld [vmem:[%s4049_s6 + $0x18] sm:$0xff]  }
  0x66   : > { %v1393_v15 = vor.u32 %v1392_v51, %v1389_v47  ;;  %v4446_v49 = vrot.slane %v1396_v29, 5  ;;  %v1414_v21 = vshll.u32 %v3227_v45, 16  ;;  %v3237_v58 = vcombine.low %v1327_v43, %v1337_v50  ;;  %v4484_v50 = vld [vmem:[%s4049_s6 + $0x64] sm:$0xf] }
  0x67   : > { %3610 = vmatmul.mubr.msk.bf16.gmra.mxu0 %vm526_vm4, %v3170_v1  ;;  %v1402_v8 = vrot.slane %v1400_v54, 4  ;;  %v1384_v48 = vrot.slane %v1382_v37, 5  ;;  %v1420_v60 = vshll.u32 %v4444_v7, 16  ;;  %v3238_v0 = vcombine.low %v1351_v46, %v1361_v38 }
  0x68   : > { %3633 = vmatprep.mubr.msk.bf16.mxu0 %vm526_vm4, %v3236_v39  ;;  %v1370_v4 = vrot.slane %v1369_v52, 4  ;;  %v1424_v62 = vshrl.u32 %v4444_v7, 16  ;;  %v1380_v1 = vrot.slane %v1379_v44, 4  ;;  %v1394_v13 = vrot.slane %v1393_v15, 4  ;;  %v4465_v39 = vld [vmem:[%s4049_s6 + $0x50] sm:$0x1] }
  0x69   : > { %v1403_v5 = vor.u32 %v1402_v8, %v4446_v49  ;;  %v1408_v22 = vrot.slane %v1406_v57, 5  ;;  %v1413_v17 = vrot.slane %v1411_v2, 4  ;;  %v1416_v14 = vrot.slane %v1414_v21, 5  ;;  %v3829_v8 = vld [vmem:[%s4044_s27 + $0xc] ss:$0 sps:$4 sm:$0xcc]  }
  0x6a   : > { %v4467_v26 = vrot.slane %v1420_v60, 5  ;;  %v1426_v31 = vrot.slane %v1424_v62, 4  ;;  %v1435_v23 = vshrl.u32 %v3230_v55, 16  ;;  %v1438_v34 = vshll.u32 %v3230_v55, 16  ;;  %s5180_s27 = sshll.u32 %s250_s24, 6 }
  0x6b   : > { %3592 = vmatmul.mubr.msk.bf16.gmra.mxu1 %vm526_vm4, %v3146_v56  ;;  %v1404_v28 = vrot.slane %v1403_v5, 4  ;;  %v1444_v56 = vshll.u32 %v4457_v10, 16  ;;  %v1448_v30 = vshrl.u32 %v4457_v10, 16  ;;  %v1789_v33 = vsel %vm551_vm2, %v1763_v16, 0  ;;  %v3822_v16 = vld [vmem:[%s4049_s6 + $0x24] sm:$0xff]   ;;  %s5193_s30 = scalar_lea.vmem [#allocation2], %s5180_s27 }
  0x6c   : > { %3615 = vmatprep.mubr.msk.bf16.mxu1 %vm526_vm4, %v3819_v3  ;;  %v1987_v36 = vsel %vm551_vm2, %v4301_v41, 0  ;;  %v1375_v40 = vsel %vm4090_vm3, %v1370_v4, %v4423_v35  ;;  %v1437_v43 = vrot.slane %v1435_v23, 4  ;;  %v1385_v37 = vsel %vm4090_vm3, %v1380_v1, %v1384_v48  ;;  %s3843_s27 = scalar_lea.vmem %s3842_s23, 2048 }
  0x6d   : > { %v1440_v45 = vrot.slane %v1438_v34, 5  ;;  %v1446_v46 = vrot.slane %v1444_v56, 5  ;;  %v1450_v47 = vrot.slane %v1448_v30, 4  ;;  %v1399_v41 = vsel %vm4090_vm3, %v1394_v13, %v4446_v49 }
  0x6e   : > { %v1417_v35 = vor.u32 %v1416_v14, %v1413_v17  ;;  %v1427_v51 = vor.u32 %v1426_v31, %v4467_v26  ;;  %v1430_v29 = vshll.u32 %v4465_v39, 16  ;;  %v1409_v38 = vsel %vm4090_vm3, %v1404_v28, %v1408_v22  ;;  %v4511_v22 = vld [vmem:[%s4049_s6 + $0x68] sm:$0x1]  ;;  %v3823_v17 = vld [vmem:[%s4049_s6 + $0x30] sm:$0xff]   ;;  %v3824_v31 = vld [vmem:[%s4049_s6 + $0x3c] sm:$0xff]  }
  0x6f   : > { %3634 = vmatmul.mubr.msk.bf16.vlgmr.msra.gmra.mxu0 %vm526_vm4, %v3237_v58  ;;  %v1459_v52 = vshrl.u32 %v3233_v61, 16  ;;  %v1462_v44 = vshll.u32 %v3233_v61, 16  ;;  %v1468_v54 = vshll.u32 %v4484_v50, 16  ;;  %v1441_v15 = vor.u32 %v1440_v45, %v1437_v43  ;;  %v3252_v61 = vld [vmem:[%s4049_s6 + $0xc] sm:$0xe] }
  0x70   : > { %3668 = vmatpush3.bf16.msra.mxu0 %v1987_v36  ;;  %3637 = vmatprep.mubr.msk.bf16.mxu0 %vm526_vm4, %v3238_v0  ;;  %v1451_v57 = vor.u32 %v1450_v47, %v1446_v46  ;;  %v1454_v49 = vshll.u32 %v4470_v25, 16  ;;  %v1472_v2 = vshrl.u32 %v4484_v50, 16  ;;  %v3239_v3 = vcombine.low %v1375_v40, %v1385_v37 }
  0x71   : > { %3732 = vmatprep.subr.msk.bf16.mxu0 %vm551_vm2, %v4490_v53  ;;  %v3240_v21 = vcombine.low %v1399_v41, %v1409_v38  ;;  %v1418_v58 = vrot.slane %v1417_v35, 4  ;;  %v1428_v48 = vrot.slane %v1427_v51, 4  ;;  %v1432_v60 = vrot.slane %v1430_v29, 5  ;;  %v3253_v41 = vld [vmem:[%s4049_s6 + $0x18] sm:$0xe]  ;;  %v3825_v51 = vld [vmem:[%s4049_s6 + $0x48] sm:$0xff]  }
  0x72   : > { %v1461_v55 = vrot.slane %v1459_v52, 4  ;;  %v1464_v0 = vrot.slane %v1462_v44, 5  ;;  %v1470_v4 = vrot.slane %v1468_v54, 5  ;;  %v1474_v5 = vrot.slane %v1472_v2, 4  ;;  %v3826_v38 = vld [vmem:[%s4049_s6 + $0x54] sm:$0xff]  }
  0x73   : > { %3616 = vmatmul.mubr.msk.bf16.vlgmr.msra.gmra.mxu1 %vm526_vm4, %v3821_v59  ;;  %v1442_v62 = vrot.slane %v1441_v15, 4  ;;  %v1452_v1 = vrot.slane %v1451_v57, 4  ;;  %v1456_v13 = vrot.slane %v1454_v49, 5  ;;  %v2346_v14 = vrot.slane %v3829_v8, 2  ;;  %v3255_v52 = vld [vmem:[%s4049_s6 + $0x30] sm:$0xe] }
  0x74   : > { %3650 = vmatpush3.bf16.msra.mxu1 %v1789_v33  ;;  %3619 = vmatprep.mubr.msk.bf16.mxu1 %vm526_vm4, %v3822_v16  ;;  %v1423_v23 = vsel %vm4090_vm3, %v1418_v58, %v4467_v26  ;;  %v1433_v28 = vsel %vm4090_vm3, %v1428_v48, %v1432_v60  ;;  %v1465_v34 = vor.u32 %v1464_v0, %v1461_v55  ;;  %v1478_v30 = vshll.u32 %v4511_v22, 16  ;;  %v3256_v2 = vld [vmem:[%s4049_s6 + $0x3c] sm:$0xe] }
  0x75   : > { %v1475_v56 = vor.u32 %v1474_v5, %v1470_v4  ;;  %3731 = vmatprep.subr.msk.bf16.mxu1 %vm551_vm2, %v2346_v14  ;;  %v1447_v33 = vsel %vm4090_vm3, %v1442_v62, %v1446_v46  ;;  %v1457_v26 = vsel %vm4090_vm3, %v1452_v1, %v1456_v13  ;;  %v1681_v36 = vrot.slane %v4289_v9, 5  ;;  %v3254_v9 = vld [vmem:[%s4049_s6 + $0x24] sm:$0xe]  ;;  %v4560_v60 = vld [vmem:[%s4049_s6 + $0x1c] sm:$0xf] }
  0x76   : > { %v3241_v40 = vcombine.low %v1423_v23, %v1433_v28  ;;  %v3260_v43 = vrot.slane %v3252_v61, 9  ;;  %v3242_v59 = vcombine.low %v1447_v33, %v1457_v26  ;;  %v1466_v37 = vrot.slane %v1465_v34, 4  ;;  %v3257_v5 = vld [vmem:[%s4049_s6 + $0x48] sm:$0xe]  ;;  %v3828_v1 = vld [vmem:[%s4049_s6 + $0x18] sm:$0xff]   ;;  %v3827_v23 = vld [vmem:[%s4049_s6 + $0x60] sm:$0xff]  }
  0x77   : > { %3638 = vmatmul.mubr.msk.bf16.gmra.mxu0 %vm526_vm4, %v3239_v3  ;;  %v1476_v45 = vrot.slane %v1475_v56, 4  ;;  %v1480_v47 = vrot.slane %v1478_v30, 5  ;;  %v1683_v16 = vrot.slane %v1681_v36, 4  ;;  %v1684_v46 = vrot.slane %v4323_v63, 5  ;;  %v3317_v3 = vld [vmem:[%s4049_s6 + $0x18] sm:$0xf] }
  0x78   : > { %3641 = vmatprep.mubr.msk.bf16.mxu0 %vm526_vm4, %v3240_v21  ;;  %v1688_v35 = vrot.slane %v4343_v12, 5  ;;  %v1695_v29 = vrot.slane %v4371_v20, 5  ;;  %v1702_v44 = vrot.slane %v4400_v11, 5  ;;  %v1471_v63 = vsel %vm4090_vm3, %v1466_v37, %v1470_v4  ;;  %v4604_v37 = vld [vmem:[%s4049_s6 + $0x20] sm:$0x1] }
  0x79   : > { %v1481_v12 = vsel %vm4090_vm3, %v1476_v45, %v1480_v47  ;;  %v1682_v54 = vsel %vm4223_vm7, %v3260_v43, %v1681_v36  ;;  %v3261_v15 = vrot.slane %v3253_v41, 9  ;;  %v1685_v20 = vsel %vm4223_vm7, %v1683_v16, %v1684_v46  ;;  %v3320_v41 = vld [vmem:[%s4049_s6 + $0x24] sm:$0xf] }
  0x7a   : > { %v1690_v57 = vrot.slane %v1688_v35, 4  ;;  %v1691_v11 = vrot.slane %v4350_v18, 5  ;;  %v3262_v49 = vrot.slane %v3254_v9, 9  ;;  %v4556_v8 = vsel %vm551_vm2, %v2346_v14, 0  ;;  %v4625_v9 = vld [vmem:[%s4049_s6 + $0x28] sm:$0xf] }
  0x7b   : > { %3620 = vmatmul.mubr.msk.bf16.gmra.mxu1 %vm526_vm4, %v3823_v17  ;;  %v1697_v21 = vrot.slane %v1695_v29, 4  ;;  %v1698_v58 = vrot.slane %v4385_v42, 5  ;;  %v3263_v48 = vrot.slane %v3255_v52, 9  ;;  %v3243_v55 = vcombine.low %v1471_v63, %v1481_v12 }
  0x7c   : > { %3623 = vmatprep.mubr.msk.bf16.mxu1 %vm526_vm4, %v3824_v31  ;;  %v1704_v18 = vrot.slane %v1702_v44, 4  ;;  %v1705_v0 = vrot.slane %v4407_v6, 5  ;;  %v1709_v4 = vrot.slane %v4413_v19, 5  ;;  %v3268_v62 = vcombine.low %v1682_v54, %v1685_v20  ;;  %v3831_v54 = vld [vmem:[%s4049_s6 + $0x30] sm:$0xff]  }
  0x7d   : > { %v4569_v13 = vsel %vm4223_vm7, %v3261_v15, %v1688_v35  ;;  %v2127_v42 = vshrl.u32 %v3317_v3, 16  ;;  %v2130_v17 = vshll.u32 %v3317_v3, 16  ;;  %v4573_v14 = vsel %vm4223_vm7, %v1690_v57, %v1691_v11  ;;  %v3358_v57 = vld [vmem:[%s4049_s6 + $0x18] sm:$0xe] }
  0x7e   : > { %v4577_v31 = vsel %vm4223_vm7, %v3262_v49, %v1695_v29  ;;  %v2136_v6 = vshll.u32 %v4560_v60, 16  ;;  %v2140_v19 = vshrl.u32 %v4560_v60, 16  ;;  %v4584_v28 = vsel %vm4223_vm7, %v1697_v21, %v1698_v58  ;;  %v3830_v29 = vld [vmem:[%s4049_s6 + $0x24] sm:$0xff]  }
  0x7f   : > { %3642 = vmatmul.mubr.msk.bf16.gmra.mxu0 %vm526_vm4, %v3241_v40  ;;  %v4588_v34 = vsel %vm4223_vm7, %v3263_v48, %v1702_v44  ;;  %v3264_v56 = vrot.slane %v3256_v2, 9  ;;  %v3265_v30 = vrot.slane %v3257_v5, 9  ;;  %v4593_v61 = vsel %vm4223_vm7, %v1704_v18, %v1705_v0  ;;  %v3258_v40 = vld [vmem:[%s4049_s6 + $0x54] sm:$0xe]  ;;  %v3259_v44 = vld [vmem:[%s4049_s6 + $0x60] sm:$0xe] }
  0x80   : > { %3645 = vmatprep.mubr.msk.bf16.mxu0 %vm526_vm4, %v3242_v59  ;;  %v1711_v33 = vrot.slane %v1709_v4, 4  ;;  %v1712_v26 = vrot.slane %v4417_v32, 5  ;;  %v1716_v36 = vrot.slane %v4444_v7, 5  ;;  %v3269_v43 = vcombine.low %v4569_v13, %v4573_v14 }
  0x81   : > { %v2625_v59 = vsel %vm551_vm2, %v4490_v53, 0  ;;  %v2129_v45 = vrot.slane %v2127_v42, 4  ;;  %v2132_v47 = vrot.slane %v2130_v17, 5  ;;  %v3270_v32 = vcombine.low %v4577_v31, %v4584_v28 }
  0x82   : > { %v1719_v7 = vrot.slane %v4465_v39, 5  ;;  %v4609_v16 = vrot.slane %v2136_v6, 5  ;;  %v2142_v46 = vrot.slane %v2140_v19, 4  ;;  %v3271_v53 = vcombine.low %v4588_v34, %v4593_v61 }
  0x83   : > { %3624 = vmatmul.mubr.msk.bf16.gmra.mxu1 %vm526_vm4, %v3825_v51  ;;  %v4617_v35 = vsel %vm4223_vm7, %v3264_v56, %v1709_v4  ;;  %v4621_v51 = vsel %vm4223_vm7, %v3265_v30, %v1716_v36  ;;  %v1723_v39 = vrot.slane %v4457_v10, 5  ;;  %v1718_v52 = vrot.slane %v1716_v36, 4  ;;  %v4673_v56 = vld [vmem:[%s4049_s6 + $0x2c] sm:$0x1]  ;;  %v3832_v30 = vld [vmem:[%s4049_s6 + $0x3c] sm:$0xff]  }
  0x84   : > { %3627 = vmatprep.mubr.msk.bf16.mxu1 %vm526_vm4, %v3826_v38  ;;  %v4631_v38 = vsel %vm4223_vm7, %v1711_v33, %v1712_v26  ;;  %v1730_v63 = vrot.slane %v4484_v50, 5  ;;  %v2146_v12 = vshll.u32 %v4604_v37, 16  ;;  %v3266_v15 = vrot.slane %v3258_v40, 9  ;;  %v3359_v36 = vld [vmem:[%s4049_s6 + $0x24] sm:$0xe] }
  0x85   : > { %v2133_v20 = vor.u32 %v2132_v47, %v2129_v45  ;;  %v2521_v10 = vrot.slane %v4560_v60, 5  ;;  %v2151_v11 = vshrl.u32 %v3320_v41, 16  ;;  %v2143_v49 = vor.u32 %v2142_v46, %v4609_v16 }
  0x86   : > { %v2154_v2 = vshll.u32 %v3320_v41, 16  ;;  %v2160_v3 = vshll.u32 %v4625_v9, 16  ;;  %v2164_v21 = vshrl.u32 %v4625_v9, 16  ;;  %v3272_v50 = vcombine.low %v4617_v35, %v4631_v38 }
  0x87   : > { %3646 = vmatmul.mubr.msk.bf16.gmra.mxu0 %vm526_vm4, %v3243_v55  ;;  %v1725_v58 = vrot.slane %v1723_v39, 4  ;;  %v1726_v48 = vrot.slane %v4470_v25, 5  ;;  %v3267_v55 = vrot.slane %v3259_v44, 9  ;;  %v1732_v60 = vrot.slane %v1730_v63, 4  ;;  %v3323_v25 = vld [vmem:[%s4049_s6 + $0x30] sm:$0xf] }
  0x88   : > { %3669 = vmatprep.mubr.msk.bf16.mxu0 %vm526_vm4, %v3828_v1  ;;  %v1733_v18 = vrot.slane %v4511_v22, 5  ;;  %v2148_v0 = vrot.slane %v2146_v12, 5  ;;  %v3366_v4 = vrot.slane %v3358_v57, 9  ;;  %v2134_v5 = vrot.slane %v2133_v20, 4  ;;  %v4653_v22 = vld [vmem:[%s4049_s6 + $0x34] sm:$0xf] }
  0x89   : > { %v2524_v1 = vrot.slane %v4604_v37, 5  ;;  %v2153_v13 = vrot.slane %v2151_v11, 4  ;;  %v2144_v42 = vrot.slane %v2143_v49, 4  ;;  %v2156_v17 = vrot.slane %v2154_v2, 5  ;;  %v3325_v44 = vld [vmem:[%s4049_s6 + $0x38] sm:$0x1] }
  0x8a   : > { %v4650_v14 = vrot.slane %v2160_v3, 5  ;;  %v2166_v31 = vrot.slane %v2164_v21, 4  ;;  %v4658_v6 = vsel %vm4223_vm7, %v1718_v52, %v1719_v7  ;;  %v4662_v19 = vsel %vm4223_vm7, %v3266_v15, %v1723_v39  ;;  %v3360_v20 = vld [vmem:[%s4049_s6 + $0x30] sm:$0xe]  ;;  %v3326_v57 = vld [vmem:[%s4049_s6 + $0x3c] sm:$0xf] }
  0x8b   : > { %3628 = vmatmul.mubr.msk.bf16.gmra.mxu1 %vm526_vm4, %v3827_v23  ;;  %v4666_v23 = vsel %vm4223_vm7, %v1725_v58, %v1726_v48  ;;  %v4670_v28 = vsel %vm4223_vm7, %v3267_v55, %v1730_v63  ;;  %v4680_v33 = vsel %vm4223_vm7, %v1732_v60, %v1733_v18  ;;  %v4684_v26 = vsel %vm4223_vm7, %v3366_v4, %v2521_v10  ;;  %v4721_v2 = vld [vmem:[%s4049_s6 + $0x40] sm:$0xf]  ;;  %v3329_v55 = vld [vmem:[%s4049_s6 + $0x48] sm:$0xf] }
  0x8c   : > { %3651 = vmatprep.mubr.msk.bf16.mxu1 %vm526_vm4, %v3268_v62  ;;  %v2523_v62 = vrot.slane %v2521_v10, 4  ;;  %v2175_v40 = vshrl.u32 %v3323_v25, 16  ;;  %v2184_v45 = vshll.u32 %v4653_v22, 16  ;;  %v2188_v47 = vshrl.u32 %v4653_v22, 16 }
  0x8d   : > { %v2157_v7 = vor.u32 %v2156_v17, %v2153_v13  ;;  %v2167_v46 = vor.u32 %v2166_v31, %v4650_v14  ;;  %v2170_v41 = vshll.u32 %v4673_v56, 16  ;;  %v3274_v39 = vcombine.low %v4662_v19, %v4666_v23  ;;  %v3835_v13 = vld [vmem:[%s4049_s6 + $0x60] sm:$0xff]  }
  0x8e   : > { %v4693_v37 = vsel %vm4223_vm7, %v2523_v62, %v2524_v1  ;;  %v2528_v52 = vrot.slane %v4625_v9, 5  ;;  %v3275_v63 = vcombine.low %v4670_v28, %v4680_v33  ;;  %v4717_v9 = vrot.slane %v2184_v45, 5  ;;  %v3834_v62 = vld [vmem:[%s4049_s6 + $0x54] sm:$0xff]  }
  0x8f   : > { %3670 = vmatmul.mubr.msk.bf16.vlgmr.msra.gmra.mxu0 %vm526_vm4, %v3830_v29  ;;  %v3367_v29 = vrot.slane %v3359_v36, 9  ;;  %v3374_v12 = vcombine.low %v4684_v26, %v4693_v37  ;;  %v2190_v11 = vrot.slane %v2188_v47, 4  ;;  %v2535_v49 = vrot.slane %v4653_v22, 5  ;;  %v4753_v36 = vld [vmem:[%s4049_s6 + $0x44] sm:$0x1] }
  0x90   : > { %3704 = vmatpush3.bf16.msra.mxu0 %v2625_v59  ;;  %3673 = vmatprep.mubr.msk.bf16.mxu0 %vm526_vm4, %v3831_v54  ;;  %v3833_v59 = vld [vmem:[%s4049_s6 + $0x48] sm:$0xff]   ;;  %v2177_v54 = vrot.slane %v2175_v40, 4  ;;  %v2158_v3 = vrot.slane %v2157_v7, 4  ;;  %v2168_v21 = vrot.slane %v2167_v46, 4  ;;  %v2172_v58 = vrot.slane %v2170_v41, 5 }
  0x91   : > { %v2531_v48 = vrot.slane %v4673_v56, 5  ;;  %v4731_v60 = vsel %vm4223_vm7, %v3367_v29, %v2528_v52  ;;  %v2530_v18 = vrot.slane %v2528_v52, 4  ;;  %v2202_v4 = vshll.u32 %v3326_v57, 16  ;;  %v3331_v29 = vld [vmem:[%s4049_s6 + $0x50] sm:$0x1] }
  0x92   : > { %v2194_v34 = vshll.u32 %v3325_v44, 16  ;;  %v2208_v61 = vshll.u32 %v4721_v2, 16  ;;  %v2537_v17 = vrot.slane %v2535_v49, 4  ;;  %v2538_v31 = vrot.slane %v3325_v44, 5 }
  0x93   : > { %3652 = vmatmul.mubr.msk.bf16.vlgmr.msra.gmra.mxu1 %vm526_vm4, %v3269_v43  ;;  %v2178_v43 = vshll.u32 %v3323_v25, 16  ;;  %v2191_v25 = vor.u32 %v2190_v11, %v4717_v9  ;;  %v2223_v22 = vshrl.u32 %v3329_v55, 16  ;;  %v2226_v56 = vshll.u32 %v3329_v55, 16 }
  0x94   : > { %3686 = vmatpush3.bf16.msra.mxu1 %v4556_v8  ;;  %3655 = vmatprep.mubr.msk.bf16.mxu1 %vm526_vm4, %v3270_v32  ;;  %v2139_v8 = vsel %vm4090_vm3, %v2134_v5, %v4609_v16  ;;  %v2149_v32 = vsel %vm4090_vm3, %v2144_v42, %v2148_v0  ;;  %v3273_v16 = vcombine.low %v4621_v51, %v4658_v6  ;;  %v2199_v0 = vshrl.u32 %v3326_v57, 16  ;;  %v4734_v5 = vld [vmem:[%s4049_s6 + $0x4c] sm:$0xf] }
  0x95   : > { %v2180_v15 = vrot.slane %v2178_v43, 5  ;;  %v4715_v10 = vcombine.low %v2139_v8, %v2149_v32  ;;  %v3368_v42 = vrot.slane %v3360_v20, 9  ;;  %v2232_v35 = vshll.u32 %v4734_v5, 16 }
  0x96   : > { %v2236_v38 = vshrl.u32 %v4734_v5, 16  ;;  %v2201_v40 = vrot.slane %v2199_v0, 4  ;;  %v2204_v43 = vrot.slane %v2202_v4, 5  ;;  %v4762_v45 = vrot.slane %v2208_v61, 5  ;;  %v3335_v61 = vld [vmem:[%s4049_s6 + $0x60] sm:$0xf] }
  0x97   : > { %3674 = vmatmul.mubr.msk.bf16.gmra.mxu0 %vm526_vm4, %v3832_v30  ;;  %v2181_v1 = vor.u32 %v2180_v15, %v2177_v54  ;;  %v2173_v30 = vsel %vm4090_vm3, %v2168_v21, %v2172_v58  ;;  %v4766_v32 = vrot.slane %v2191_v25, 4  ;;  %v4768_v7 = vrot.slane %v2194_v34, 5  ;;  %v3836_v21 = vld [vmem:[%s4049_s6 + $0x6c] sm:$0xff]  }
  0x98   : > { %3677 = vmatprep.mubr.msk.bf16.mxu0 %vm526_vm4, %v3833_v59  ;;  %v4758_v59 = vsel %vm4223_vm7, %v2530_v18, %v2531_v48  ;;  %v4772_v46 = vsel %vm4223_vm7, %v3368_v42, %v2535_v49  ;;  %v4776_v41 = vsel %vm4223_vm7, %v2537_v17, %v2538_v31  ;;  %v2225_v52 = vrot.slane %v2223_v22, 4  ;;  %v4812_v18 = vld [vmem:[%s4049_s6 + $0x58] sm:$0xf]  ;;  %v4822_v42 = vld [vmem:[%s4049_s6 + $0x64] sm:$0xf] }
  0x99   : > { %v4760_v8 = vrot.slane %v2181_v1, 4  ;;  %v2228_v44 = vrot.slane %v2226_v56, 5  ;;  %v4779_v54 = vrot.slane %v2232_v35, 5  ;;  %v2238_v15 = vrot.slane %v2236_v38, 4 }
  0x9a   : > { %v2205_v57 = vor.u32 %v2204_v43, %v2201_v40  ;;  %v2218_v11 = vshll.u32 %v4753_v36, 16  ;;  %v3375_v51 = vcombine.low %v4731_v60, %v4758_v59  ;;  %v2242_v58 = vshll.u32 %v3331_v29, 16 }
  0x9b   : > { %3656 = vmatmul.mubr.msk.bf16.gmra.mxu1 %vm526_vm4, %v3271_v53  ;;  %v2212_v53 = vshrl.u32 %v4721_v2, 16  ;;  %v2187_v48 = vsel %vm4090_vm3, %v4760_v8, %v4717_v9  ;;  %v2197_v19 = vsel %vm4090_vm3, %v4766_v32, %v4768_v7  ;;  %v3376_v23 = vcombine.low %v4772_v46, %v4776_v41  ;;  %v3363_v46 = vld [vmem:[%s4049_s6 + $0x54] sm:$0xe]  ;;  %v3337_v41 = vld [vmem:[%s4049_s6 + $0x68] sm:$0x1] }
  0x9c   : > { %3659 = vmatprep.mubr.msk.bf16.mxu1 %vm526_vm4, %v3272_v50  ;;  %v2163_v50 = vsel %vm4090_vm3, %v2158_v3, %v4650_v14  ;;  %v3361_v14 = vld [vmem:[%s4049_s6 + $0x3c] sm:$0xe]  ;;  %v3332_v3 = vld [vmem:[%s4049_s6 + $0x54] sm:$0xf]  ;;  %v2549_v55 = vrot.slane %v4734_v5, 5  ;;  %v2239_v60 = vor.u32 %v2238_v15, %v4779_v54  ;;  %v2206_v9 = vrot.slane %v2205_v57, 4 }
  0x9d   : > { %v2214_v47 = vrot.slane %v2212_v53, 4  ;;  %v4785_v20 = vcombine.low %v2163_v50, %v2173_v30  ;;  %v3369_v49 = vrot.slane %v3361_v14, 9  ;;  %v2247_v0 = vshrl.u32 %v3332_v3, 16 }
  0x9e   : > { %v2250_v4 = vshll.u32 %v3332_v3, 16  ;;  %v2545_v34 = vrot.slane %v4753_v36, 5  ;;  %v2551_v17 = vrot.slane %v2549_v55, 4  ;;  %v2552_v31 = vrot.slane %v3331_v29, 5  ;;  %v3334_v36 = vld [vmem:[%s4049_s6 + $0x5c] sm:$0x1] }
  0x9f   : > { %3678 = vmatmul.mubr.msk.bf16.gmra.mxu0 %vm526_vm4, %v3834_v62  ;;  %v2215_v6 = vor.u32 %v2214_v47, %v4762_v45  ;;  %v2220_v62 = vrot.slane %v2218_v11, 5  ;;  %v2256_v22 = vshll.u32 %v4812_v18, 16  ;;  %v2260_v56 = vshrl.u32 %v4812_v18, 16  ;;  %v3338_v3 = vld [vmem:[%s4049_s6 + $0x6c] sm:$0xf] }
  0xa0   : > { %3681 = vmatprep.mubr.msk.bf16.mxu0 %vm526_vm4, %v3835_v13  ;;  %v2244_v13 = vrot.slane %v2242_v58, 5  ;;  %v2240_v38 = vrot.slane %v2239_v60, 4  ;;  %v2249_v50 = vrot.slane %v2247_v0, 4  ;;  %v2252_v30 = vrot.slane %v2250_v4, 5 }
  0xa1   : > { %v2216_v5 = vrot.slane %v2215_v6, 4  ;;  %v2271_v40 = vshrl.u32 %v3335_v61, 16  ;;  %v2274_v26 = vshll.u32 %v3335_v61, 16  ;;  %v2280_v37 = vshll.u32 %v4822_v42, 16 }
  0xa2   : > { %v2211_v43 = vsel %vm4090_vm3, %v2206_v9, %v4762_v45  ;;  %v2553_v59 = vsel %vm4223_vm7, %v2551_v17, %v2552_v31  ;;  %v4852_v8 = vrot.slane %v2256_v22, 5  ;;  %v2556_v47 = vrot.slane %v4812_v18, 5  ;;  %v4891_v17 = vld [vmem:[%s274_s13] sm:$0xff] }
  0xa3   : > { %3660 = vmatmul.mubr.msk.bf16.gmra.mxu1 %vm526_vm4, %v3273_v16  ;;  %v2542_v16 = vrot.slane %v4721_v2, 5  ;;  %v2229_v2 = vor.u32 %v2228_v44, %v2225_v52  ;;  %v2221_v28 = vsel %vm4090_vm3, %v2216_v5, %v2220_v62  ;;  %v2245_v14 = vsel %vm4090_vm3, %v2240_v38, %v2244_v13 }
  0xa4   : > { %3663 = vmatprep.mubr.msk.bf16.mxu1 %vm526_vm4, %v3274_v39  ;;  %v3362_v39 = vld [vmem:[%s4049_s6 + $0x48] sm:$0xe]  ;;  %v2253_v32 = vor.u32 %v2252_v30, %v2249_v50  ;;  %v2266_v7 = vshll.u32 %v3334_v36, 16  ;;  %v2273_v29 = vrot.slane %v2271_v40, 4  ;;  %v2276_v52 = vrot.slane %v2274_v26, 5 }
  0xa5   : > { %v4816_v1 = vsel %vm4223_vm7, %v3369_v49, %v2542_v16  ;;  %v2544_v53 = vrot.slane %v2542_v16, 4  ;;  %v3370_v25 = vrot.slane %v3362_v39, 9  ;;  %v2230_v35 = vrot.slane %v2229_v2, 4  ;;  %v4872_v39 = vld [vmem:[%s4049_s6 + $0x70] sm:$0xf] }
  0xa6   : > { %v4862_v44 = vrot.slane %v2280_v37, 5  ;;  %v3343_v57 = vcombine.low %v2187_v48, %v2197_v19  ;;  %v3344_v11 = vcombine.low %v2211_v43, %v2221_v28  ;;  %v3371_v6 = vrot.slane %v3363_v46, 9  ;;  %v3340_v40 = vld [vmem:[%s4049_s6 + $0x74] sm:$0x1] }
  0xa7   : > { %3682 = vmatmul.mubr.msk.bf16.gmra.mxu0 %vm526_vm4, %v3836_v21  ;;  %v2546_v33 = vsel %vm4223_vm7, %v2544_v53, %v2545_v34  ;;  %v2235_v45 = vsel %vm4090_vm3, %v2230_v35, %v4779_v54  ;;  %v2558_v16 = vrot.slane %v2556_v47, 4  ;;  %v2559_v58 = vrot.slane %v3334_v36, 5 }
  0xa8   : > { %3705 = vmatprep.mubr.msk.bf16.mxu0 %vm526_vm4, %v3374_v12  ;;  %v2284_v12 = vshrl.u32 %v4822_v42, 16  ;;  %v3377_v54 = vcombine.low %v4816_v1, %v2546_v33  ;;  %v2290_v48 = vshll.u32 %v3337_v41, 16  ;;  %v2563_v19 = vrot.slane %v4822_v42, 5 }
  0xa9   : > { %v2254_v2 = vrot.slane %v2253_v32, 4  ;;  %v2277_v60 = vor.u32 %v2276_v52, %v2273_v29  ;;  %v2741_v0 = vlaneseq  ;;  %v2295_v4 = vshrl.u32 %v3338_v3, 16 }
  0xaa   : > { %v2286_v15 = vrot.slane %v2284_v12, 4  ;;  %v2298_v9 = vshll.u32 %v3338_v3, 16  ;;  %v2304_v62 = vshll.u32 %v4872_v39, 16  ;;  %v2308_v1 = vshrl.u32 %v4872_v39, 16 }
  0xab   : > { %3664 = vmatmul.mubr.msk.bf16.gmra.mxu1 %vm526_vm4, %v3275_v63  ;;  %v4848_v63 = vsel %vm4223_vm7, %v3370_v25, %v2549_v55  ;;  %v3345_v55 = vcombine.low %v2235_v45, %v2245_v14  ;;  %v2560_v61 = vsel %vm4223_vm7, %v2558_v16, %v2559_v58  ;;  %v4889_v5 = vshrl.u32 %v2741_v0, 7 }
  0xac   : > { %3687 = vmatprep.mubr.msk.bf16.mxu1 %vm526_vm4, %v4715_v10  ;;  %v2262_v10 = vrot.slane %v2260_v56, 4  ;;  %v3378_v49 = vcombine.low %v4848_v63, %v2553_v59  ;;  %v2287_v18 = vor.u32 %v2286_v15, %v4862_v44  ;;  %v2292_v53 = vrot.slane %v2290_v48, 5  ;;  %v3365_v63 = vld [vmem:[%s4049_s6 + $0x6c] sm:$0xe] }
  0xad   : > { %v2565_v25 = vrot.slane %v2563_v19, 4  ;;  %v2566_v42 = vrot.slane %v3337_v41, 5  ;;  %v2278_v31 = vrot.slane %v2277_v60, 4  ;;  %v2743_v56 = vsub.s32 0, %v4889_v5 }
  0xae   : > { %v2263_v21 = vor.u32 %v2262_v10, %v4852_v8  ;;  %v2288_v22 = vrot.slane %v2287_v18, 4  ;;  %v2754_v35 = vsub.s32 1, %v4889_v5  ;;  %v2297_v38 = vrot.slane %v2295_v4, 4 }
  0xaf   : > { %3706 = vmatmul.mubr.msk.bf16.vlgmr.msra.gmra.mxu0 %vm526_vm4, %v3375_v51  ;;  %v2268_v51 = vrot.slane %v2266_v7, 5  ;;  %v2300_v50 = vrot.slane %v2298_v9, 5  ;;  %v2306_v30 = vrot.slane %v2304_v62, 5  ;;  %v2310_v36 = vrot.slane %v2308_v1, 4 }
  0xb0   : > { %3709 = vmatprep.mubr.msk.bf16.mxu0 %vm526_vm4, %v3376_v23  ;;  %v3364_v23 = vld [vmem:[%s4049_s6 + $0x60] sm:$0xe]  ;;  %v2264_v34 = vrot.slane %v2263_v21, 4  ;;  %v2570_v26 = vrot.slane %v4872_v39, 5  ;;  %v2744_v37 = vrot.slane %v4891_v17, %v2743_v56  ;;  %v2755_v12 = vrot.slane %v4891_v17, %v2754_v35  ;;  %s3410_s6 = sshll.u32 %s3917_s19, 5  ;;  %s2997_s19 = sshll.u32 %s5193_s30, 4  ;;  %s5233_s19 = int_to_ptr.vmem [resolvable:$true] %s2997_s19 }
  0xb1   : > { %v3372_v13 = vrot.slane %v3364_v23, 9  ;;  %v2259_v43 = vsel %vm4090_vm3, %v2254_v2, %v4852_v8  ;;  %v2567_v33 = vsel %vm4223_vm7, %v2565_v25, %v2566_v42  ;;  %v2765_v8 = vsub.s32 2, %v4889_v5  ;;  %s2994_s10 = sadd.s32 %s3430_s5, %s3410_s6  ;;  %s3837_s13 = scalar_lea.vmem %s5233_s19, 1024 }
  0xb2   : > { %v2269_v59 = vsel %vm4090_vm3, %v2264_v34, %v2268_v51  ;;  %2746 = vbcast.lane.b32.xlu0 %v2744_v37, 256  ;;  %v2293_v45 = vsel %vm4090_vm3, %v2288_v22, %v2292_v53  ;;  %v2301_v14 = vor.u32 %v2300_v50, %v2297_v38  ;;  %v2311_v32 = vor.u32 %v2310_v36, %v2306_v30  ;;  %s3411_s18 = sshll.u32 %s2994_s10, 6  ;;  %p3838_p0 = scmp.ne.s32.totalorder %s5233_s19, %s3837_s13 }
  0xb3   : > { %3688 = vmatmul.mubr.msk.bf16.vlgmr.msra.gmra.mxu1 %vm526_vm4, %v4785_v20  ;;  %v2557_v20 = vsel %vm4223_vm7, %v3371_v6, %v2556_v47  ;;  %v2564_v28 = vsel %vm4223_vm7, %v3372_v13, %v2563_v19  ;;  %v2283_v47 = vsel %vm4090_vm3, %v2278_v31, %v4862_v44  ;;  %v2314_v7 = vshll.u32 %v3340_v40, 16  ;;  %2757 = vbcast.lane.b32.xlu1 %v2755_v12, 256  ;;  %s5231_s9 = scalar_lea.hbm %s5294_s4, %s3411_s18  ;;  %p3844_p4 = scmp.lt.s32.totalorder %s5233_s19, %s3842_s23 }
  0xb4   : > { %3691 = vmatprep.mubr.msk.bf16.mxu1 %vm526_vm4, %v3343_v57  ;;  %v3379_v10 = vcombine.low %v2557_v20, %v2560_v61  ;;  %v3380_v46 = vcombine.low %v2564_v28, %v2567_v33  ;;  %v3373_v41 = vrot.slane %v3365_v63, 9  ;;  %v2572_v29 = vrot.slane %v2570_v26, 4  ;;  %p3839_p1 = pnand %p3838_p0, %p4010_p3  ;;  %p3845_p5 = scmp.lt.s32.totalorder %s3843_s27, %s3837_s13 }
  0xb5   : > { %v2573_v52 = vrot.slane %v3340_v40, 5  ;;  %v3346_v15 = vcombine.low %v2259_v43, %v2269_v59  ;;  %v2766_v44 = vrot.slane %v4891_v17, %v2765_v8  ;;  %v2776_v57 = vsub.s32 3, %v4889_v5 }
  0xb6   : > { %2750 = vbcast.lane.b32.xlu0 %v2744_v37, 264  ;;  %v2316_v3 = vrot.slane %v2314_v7, 5  ;;  %v2571_v21 = vsel %vm4223_vm7, %v3373_v41, %v2570_v26  ;;  %v2787_v58 = vsub.s32 4, %v4889_v5  ;;  %v2798_v19 = vsub.s32 5, %v4889_v5  ;;  %p3840_p2 = pneg %p3839_p1  ;;  %p3846_p6 = por %p3845_p5, %p3844_p4 }
  0xb7   : > { %3710 = vmatmul.mubr.msk.bf16.gmra.mxu0 %vm526_vm4, %v3377_v54  ;;  %v2302_v54 = vrot.slane %v2301_v14, 4  ;;  %2761 = vbcast.lane.b32.xlu1 %v2755_v12, 264  ;;  %v2574_v6 = vsel %vm4223_vm7, %v2572_v29, %v2573_v52  ;;  %v2777_v16 = vrot.slane %v4891_v17, %v2776_v57  ;;  %v2809_v60 = vsub.s32 6, %v4889_v5 }
  0xb8   : > { %3713 = vmatprep.mubr.msk.bf16.mxu0 %vm526_vm4, %v3378_v49  ;;  %v2312_v49 = vrot.slane %v2311_v32, 4  ;;  %v3381_v51 = vcombine.low %v2571_v21, %v2574_v6  ;;  %v2788_v24 = vrot.slane %v4891_v17, %v2787_v58  ;;  %v2799_v2 = vrot.slane %v4891_v17, %v2798_v19  ;;  %p3847_p7 = pnand %p3846_p6, %p3840_p2 }
  0xb9   : > { %v2307_v39 = vsel %vm4090_vm3, %v2302_v54, %v2306_v30  ;;  %v2810_v27 = vrot.slane %v4891_v17, %v2809_v60  ;;  %v2820_v18 = vsub.s32 7, %v4889_v5 }
  0xba   : > { %2768 = vbcast.lane.b32.xlu0 %v2766_v44, 256 }
  0xbb   : > { %3692 = vmatmul.mubr.msk.bf16.gmra.mxu1 %vm526_vm4, %v3344_v11  ;;  %v3347_v11 = vcombine.low %v2283_v47, %v2293_v45  ;;  %2772 = vbcast.lane.b32.xlu1 %v2766_v44, 264  ;;  %v2821_v23 = vrot.slane %v4891_v17, %v2820_v18 }
  0xbc   : > { %3695 = vmatprep.mubr.msk.bf16.mxu1 %vm526_vm4, %v3345_v55  ;;  %v2317_v55 = vsel %vm4090_vm3, %v2312_v49, %v2316_v3 }
  0xbd   : > { %v3348_v48 = vcombine.low %v2307_v39, %v2317_v55 }
  0xbe   : > { %2779 = vbcast.lane.b32.xlu0 %v2777_v16, 256 }
  0xbf   : > { %3714 = vmatmul.mubr.msk.bf16.gmra.mxu0 %vm526_vm4, %v3379_v10  ;;  %2783 = vbcast.lane.b32.xlu1 %v2777_v16, 264 }
  0xc0   : > { %3717 = vmatprep.mubr.msk.bf16.mxu0 %vm526_vm4, %v3380_v46 }
  0xc2   : > { %2790 = vbcast.lane.b32.xlu0 %v2788_v24, 256 }
  0xc3   : > { %3696 = vmatmul.mubr.msk.bf16.gmra.mxu1 %vm526_vm4, %v3346_v15  ;;  %2794 = vbcast.lane.b32.xlu1 %v2788_v24, 264 }
  0xc4   : > { %3699 = vmatprep.mubr.msk.bf16.mxu1 %vm526_vm4, %v3347_v11 }
  0xc6   : > { %2801 = vbcast.lane.b32.xlu0 %v2799_v2, 256 }
  0xc7   : > { %3718 = vmatmul.mubr.msk.bf16.gmra.mxu0 %vm526_vm4, %v3381_v51  ;;  %2805 = vbcast.lane.b32.xlu1 %v2799_v2, 264 }
  0xca   : > { %2812 = vbcast.lane.b32.xlu0 %v2810_v27, 256 }
  0xcb   : > { %3700 = vmatmul.mubr.msk.bf16.gmra.mxu1 %vm526_vm4, %v3348_v48  ;;  %2816 = vbcast.lane.b32.xlu1 %v2810_v27, 264 }
  0xce   : > { %2823 = vbcast.lane.b32.xlu0 %v2821_v23, 256 }
  0xcf   : > { %2827 = vbcast.lane.b32.xlu1 %v2821_v23, 264 }
  0xf3   : > { %v3563_v0 = vpop.f32.mrf.mxu0 }
  0xf5   : > { %v589_v9 = vpop.f32.mrf.mxu0 }
  0xf7   : > { %v3564_v1 = vpop.f32.mrf.mxu0 }
  0xf9   : > { %v3571_v4 = vpop.f32.mrf.mxu1  ;;  %v592_v20 = vpop.f32.mrf.mxu0 }
  0xfb   : > { %v621_v62 = vpop.f32.mrf.mxu1 }
  0xfd   : > { %v3572_v34 = vpop.f32.mrf.mxu1 }
  0xff   : > { %v624_v61 = vpop.f32.mrf.mxu1 }
 0x107   : > { %v3567_v53 = vpop.f32.mrf.mxu0 }
 0x109   : > { %v605_v13 = vpop.f32.mrf.mxu0 }
 0x10b   : > { %v3575_v25 = vpop.f32.mrf.mxu1  ;;  %v3568_v42 = vpop.f32.mrf.mxu0 }
 0x10d   : > { %v637_v5 = vpop.f32.mrf.mxu1  ;;  %v608_v31 = vpop.f32.mrf.mxu0 }
 0x10f   : > { %v3576_v22 = vpop.f32.mrf.mxu1  ;;  %v3599_v56 = vpop.f32.mrf.mxu0 }
 0x111   : > { %v4944_v17 = vpop.f32.mrf.mxu1  ;;  %v985_v35 = vpop.f32.mrf.mxu0 }
 0x113   : > { %v3581_v38 = vpop.f32.mrf.mxu1  ;;  %v3600_v30 = vpop.f32.mrf.mxu0 }
 0x114   : > { %v762_v50 = vadd.f32 %v3581_v38, %v3563_v0 }
 0x115   : > { %v753_v36 = vpop.f32.mrf.mxu1  ;;  %v988_v37 = vpop.f32.mrf.mxu0 }
 0x116   : > { %v4946_v40 = vadd.f32 %v3599_v56, %v762_v50  ;;  %v754_v26 = vadd.f32 %v753_v36, %v589_v9 }
 0x117   : > { %v3582_v12 = vpop.f32.mrf.mxu1  ;;  %v3603_v33 = vpop.f32.mrf.mxu0 }
 0x118   : > { %v4948_v43 = vadd.f32 %v985_v35, %v754_v26  ;;  %v765_v28 = vadd.f32 %v3582_v12, %v3564_v1 }
 0x119   : > { %v756_v63 = vpop.f32.mrf.mxu1  ;;  %v1001_v47 = vpop.f32.mrf.mxu0 }
 0x11a   : > { %v4950_v59 = vadd.f32 %v3600_v30, %v765_v28  ;;  %v757_v10 = vadd.f32 %v756_v63, %v592_v20 }
 0x11b   : > { %v3585_v8 = vpop.f32.mrf.mxu1  ;;  %v3604_v32 = vpop.f32.mrf.mxu0 }
 0x11c   : > { %v4952_v45 = vadd.f32 %v988_v37, %v757_v10  ;;  %v778_v14 = vadd.f32 %v3585_v8, %v3567_v53 }
 0x11d   : > { %v769_v7 = vpop.f32.mrf.mxu1  ;;  %v1004_v29 = vpop.f32.mrf.mxu0 }
 0x11e   : > { %v4954_v46 = vadd.f32 %v3603_v33, %v778_v14  ;;  %v770_v41 = vadd.f32 %v769_v7, %v605_v13 }
 0x11f   : > { %v3586_v52 = vpop.f32.mrf.mxu1  ;;  %v3607_v57 = vpop.f32.mrf.mxu0 }
 0x120   : > { %v4956_v15 = vadd.f32 %v1001_v47, %v770_v41  ;;  %v781_v44 = vadd.f32 %v3586_v52, %v3568_v42 }
 0x121   : > { %v772_v11 = vpop.f32.mrf.mxu1  ;;  %v1017_v3 = vpop.f32.mrf.mxu0 }
 0x122   : > { %v4958_v54 = vadd.f32 %v3604_v32, %v781_v44  ;;  %v773_v49 = vadd.f32 %v772_v11, %v608_v31 }
 0x123   : > { %v3589_v21 = vpop.f32.mrf.mxu1  ;;  %v3608_v58 = vpop.f32.mrf.mxu0 }
 0x124   : > { %v4960_v6 = vadd.f32 %v1004_v29, %v773_v49  ;;  %v794_v16 = vadd.f32 %v3589_v21, %v3571_v4 }
 0x125   : > { %v785_v39 = vpop.f32.mrf.mxu1  ;;  %v1020_v48 = vpop.f32.mrf.mxu0 }
 0x126   : > { %v4962_v55 = vadd.f32 %v3607_v57, %v794_v16  ;;  %v786_v51 = vadd.f32 %v785_v39, %v621_v62 }
 0x127   : > { %v3590_v24 = vpop.f32.mrf.mxu1  ;;  %v3611_v60 = vpop.f32.mrf.mxu0 }
 0x128   : > { %v4964_v19 = vadd.f32 %v1017_v3, %v786_v51  ;;  %v797_v2 = vadd.f32 %v3590_v24, %v3572_v34 }
 0x129   : > { %v788_v27 = vpop.f32.mrf.mxu1  ;;  %v1033_v0 = vpop.f32.mrf.mxu0 }
 0x12a   : > { %v4966_v18 = vadd.f32 %v3608_v58, %v797_v2  ;;  %v789_v23 = vadd.f32 %v788_v27, %v624_v61 }
 0x12b   : > { %v3593_v9 = vpop.f32.mrf.mxu1  ;;  %v3612_v20 = vpop.f32.mrf.mxu0 }
 0x12c   : > { %v4968_v1 = vadd.f32 %v1020_v48, %v789_v23  ;;  %v810_v4 = vadd.f32 %v3593_v9, %v3575_v25 }
 0x12d   : > { %v801_v53 = vpop.f32.mrf.mxu1  ;;  %v1036_v42 = vpop.f32.mrf.mxu0 }
 0x12e   : > { %v4970_v13 = vadd.f32 %v3611_v60, %v810_v4  ;;  %v802_v62 = vadd.f32 %v801_v53, %v637_v5 }
 0x12f   : > { %v3594_v31 = vpop.f32.mrf.mxu1  ;;  %v4974_v35 = vpop.f32.mrf.mxu0 }
 0x130   : > { %v4972_v56 = vadd.f32 %v1033_v0, %v802_v62  ;;  %v813_v34 = vadd.f32 %v3594_v31, %v3576_v22 }
 0x131   : > { %v804_v38 = vpop.f32.mrf.mxu1  ;;  %v4979_v30 = vpop.f32.mrf.mxu0 }
 0x132   : > { %v4976_v50 = vadd.f32 %v3612_v20, %v813_v34  ;;  %v805_v61 = vadd.f32 %v804_v38, %v4944_v17 }
 0x133   : > { %v3617_v25 = vpop.f32.mrf.mxu1  ;;  %v4983_v26 = vpop.f32.mrf.mxu0 }
 0x134   : > { %v4981_v36 = vadd.f32 %v1036_v42, %v805_v61 }
 0x135   : > { %v1187_v5 = vpop.f32.mrf.mxu1  ;;  %v4985_v37 = vpop.f32.mrf.mxu0 }
 0x137   : > { %v3618_v12 = vpop.f32.mrf.mxu1  ;;  %v4987_v28 = vpop.f32.mrf.mxu0 }
 0x139   : > { %v1190_v22 = vpop.f32.mrf.mxu1  ;;  %v4989_v33 = vpop.f32.mrf.mxu0 }
 0x13b   : > { %v4991_v63 = vpop.f32.mrf.mxu1  ;;  %v4993_v10 = vpop.f32.mrf.mxu0 }
 0x13d   : > { %v1203_v17 = vpop.f32.mrf.mxu1  ;;  %v4995_v47 = vpop.f32.mrf.mxu0 }
 0x13f   : > { %v3622_v8 = vpop.f32.mrf.mxu1  ;;  %v4997_v14 = vpop.f32.mrf.mxu0 }
 0x141   : > { %v1206_v32 = vpop.f32.mrf.mxu1  ;;  %v4999_v7 = vpop.f32.mrf.mxu0 }
 0x143   : > { %v5001_v41 = vpop.f32.mrf.mxu1  ;;  %v5003_v29 = vpop.f32.mrf.mxu0 }
 0x145   : > { %v5005_v52 = vpop.f32.mrf.mxu1  ;;  %v5007_v44 = vpop.f32.mrf.mxu0 }
 0x147   : > { %v3626_v57 = vpop.f32.mrf.mxu1  ;;  %v5009_v11 = vpop.f32.mrf.mxu0 }
 0x149   : > { %v5011_v49 = vpop.f32.mrf.mxu1  ;;  %v5013_v3 = vpop.f32.mrf.mxu0 }
 0x14a   : > { %5301 = vst [vmem:[#allocation5_spill] sm:$0xff] %v5013_v3 }
 0x14b   : > { %v5015_v21 = vpop.f32.mrf.mxu1  ;;  %v5017_v16 = vpop.f32.mrf.mxu0 }
 0x14c   : > { %5302 = vst [vmem:[#allocation6_spill] sm:$0xff] %v5017_v16 }
 0x14d   : > { %v5019_v58 = vpop.f32.mrf.mxu1  ;;  %v5021_v39 = vpop.f32.mrf.mxu0 }
 0x14e   : > { %5303 = vst [vmem:[#allocation7_spill] sm:$0xff] %v5021_v39 }
 0x14f   : > { %v5023_v51 = vpop.f32.mrf.mxu1  ;;  %v3671_v48 = vpop.f32.mrf.mxu0 }
 0x151   : > { %v5025_v24 = vpop.f32.mrf.mxu1  ;;  %v5027_v2 = vpop.f32.mrf.mxu0 }
 0x153   : > { %v3653_v60 = vpop.f32.mrf.mxu1  ;;  %v5029_v27 = vpop.f32.mrf.mxu0 }
 0x155   : > { %v1825_v23 = vpop.f32.mrf.mxu1  ;;  %v5031_v0 = vpop.f32.mrf.mxu0 }
 0x156   : > { %5304 = vst [vmem:[#allocation8_spill] sm:$0xff] %v5031_v0 }
 0x157   : > { %v3654_v9 = vpop.f32.mrf.mxu1  ;;  %v5033_v4 = vpop.f32.mrf.mxu0 }
 0x158   : > { %5305 = vst [vmem:[#allocation9_spill] sm:$0xff] %v5033_v4 }
 0x159   : > { %v1828_v20 = vpop.f32.mrf.mxu1  ;;  %v5035_v53 = vpop.f32.mrf.mxu0 }
 0x15a   : > { %5306 = vst [vmem:[#allocation10_spill] sm:$0xff] %v5035_v53  ;;  %v5057_v53 = vpop.permute.xlu0 %2746 }
 0x15b   : > { %v5037_v62 = vpop.f32.mrf.mxu1  ;;  %v5039_v42 = vpop.f32.mrf.mxu0  ;;  %5316 = vst [vmem:[#allocation20_spill] sm:$0xff] %v5057_v53 }
 0x15c   : > { %5307 = vst [vmem:[#allocation11_spill] sm:$0xff] %v5039_v42 }
 0x15d   : > { %v5041_v31 = vpop.f32.mrf.mxu1  ;;  %v5043_v34 = vpop.f32.mrf.mxu0 }
 0x15e   : > { %5308 = vst [vmem:[#allocation12_spill] sm:$0xff] %v5041_v31  ;;  %5309 = vst [vmem:[#allocation13_spill] sm:$0xff] %v5043_v34  ;;  %v5063_v31 = vpop.permute.xlu1 %2757 }
 0x15f   : > { %v5045_v38 = vpop.f32.mrf.mxu1  ;;  %v5047_v61 = vpop.f32.mrf.mxu0  ;;  %5319 = vst [vmem:[#allocation23_spill] sm:$0xff] %v5063_v31 }
 0x160   : > { %5310 = vst [vmem:[#allocation14_spill] sm:$0xff] %v5045_v38  ;;  %5311 = vst [vmem:[#allocation15_spill] sm:$0xff] %v5047_v61  ;;  %v1252_v61 = vadd.f32 %v3617_v25, %v4946_v40 }
 0x161   : > { %v5049_v39 = vpop.f32.mrf.mxu1  ;;  %v5051_v16 = vpop.f32.mrf.mxu0 }
 0x162   : > { %5312 = vst [vmem:[#allocation16_spill] sm:$0xff] %v5049_v39  ;;  %5313 = vst [vmem:[#allocation17_spill] sm:$0xff] %v5051_v16  ;;  %v1250_v16 = vadd.f32 %v1187_v5, %v4948_v43  ;;  %v1251_v43 = vadd.f32 %v1190_v22, %v4952_v45  ;;  %v1260_v45 = vadd.f32 %v5001_v41, %v4962_v55 }
 0x163   : > { %v5053_v4 = vpop.f32.mrf.mxu1  ;;  %v5055_v3 = vpop.f32.mrf.mxu0 }
 0x164   : > { %5314 = vst [vmem:[#allocation18_spill] sm:$0xff] %v5053_v4  ;;  %5315 = vst [vmem:[#allocation19_spill] sm:$0xff] %v5055_v3  ;;  %v5075_v3 = vpop.permute.xlu0 %2750  ;;  %v1631_v25 = vadd.f32 %v4979_v30, %v1250_v16 }
 0x165   : > { %v5059_v0 = vpop.f32.mrf.mxu1  ;;  %v5061_v42 = vpop.f32.mrf.mxu0 }
 0x166   : > { %5317 = vst [vmem:[#allocation21_spill] sm:$0xff] %v5059_v0  ;;  %5318 = vst [vmem:[#allocation22_spill] sm:$0xff] %v5061_v42  ;;  %v1633_v42 = vadd.f32 %v4974_v35, %v1252_v61  ;;  %v1253_v0 = vadd.f32 %v3618_v12, %v4950_v59  ;;  %v1254_v35 = vadd.f32 %v1203_v17, %v4956_v15 }
 0x167   : > { %v5065_v34 = vpop.f32.mrf.mxu1  ;;  %v5068_v38 = vpop.f32.mrf.mxu0  ;;  %v1257_v59 = vadd.f32 %v3622_v8, %v4958_v54  ;;  %v1261_v15 = vadd.f32 %v3626_v57, %v4966_v18  ;;  %v1632_v54 = vadd.f32 %v4985_v37, %v1251_v43  ;;  %v1264_v18 = vadd.f32 %v5015_v21, %v4970_v13 }
 0x168   : > { %5320 = vst [vmem:[#allocation24_spill] sm:$0xff] %v5065_v34  ;;  %5321 = vst [vmem:[#allocation25_spill] sm:$0xff] %v5068_v38  ;;  %v5083_v34 = vpop.permute.xlu1 %2761  ;;  %v1890_v5 = vadd.f32 %v3653_v60, %v1633_v42  ;;  %v1256_v38 = vadd.f32 %v4991_v63, %v4954_v46  ;;  %v1634_v61 = vadd.f32 %v4983_v26, %v1253_v0  ;;  %v5099_v16 = vpop.permute.xlu0 %2768  ;;  %v5326_v42 = vld [vmem:[#allocation23_spill] sm:$0xff] }
 0x169   : > { %v5070_v39 = vpop.f32.mrf.mxu1  ;;  %v5073_v4 = vpop.f32.mrf.mxu0  ;;  %v1258_v46 = vadd.f32 %v5005_v52, %v4964_v19  ;;  %v1259_v26 = vadd.f32 %v5011_v49, %v4968_v1  ;;  %v1635_v55 = vadd.f32 %v4989_v33, %v1254_v35  ;;  %v1638_v19 = vadd.f32 %v4993_v10, %v1257_v59  ;;  %v5330_v43 = vld [vmem:[#allocation16_spill] sm:$0xff] }
 0x16a   : > { %5322 = vst [vmem:[#allocation26_spill] sm:$0xff] %v5073_v4  ;;  %v1891_v63 = vadd.f32 %v3654_v9, %v1634_v61  ;;  %v1889_v1 = vadd.f32 %v1828_v20, %v1632_v54  ;;  %v1262_v33 = vadd.f32 %v5019_v58, %v4972_v56  ;;  %v5130_v9 = vadd.f32 %v5009_v11, %v1264_v18  ;;  %v5325_v58 = vld [vmem:[#allocation8_spill] sm:$0xff]  ;;  %v5332_v54 = vld [vmem:[#allocation6_spill] sm:$0xff] }
 0x16b   : > { %v5077_v53 = vpop.f32.mrf.mxu1  ;;  %v5081_v31 = vpop.f32.mrf.mxu0  ;;  %v1639_v60 = vadd.f32 %v4999_v7, %v1258_v46  ;;  %v5126_v13 = vadd.f32 %v5007_v44, %v1259_v26  ;;  %v1263_v7 = vadd.f32 %v5025_v24, %v4981_v36  ;;  %v5328_v36 = vld [vmem:[#allocation12_spill] sm:$0xff] }
 0x16c   : > { %5323 = vst [vmem:[#allocation27_spill] sm:$0xff] %v5081_v31  ;;  %v1255_v31 = vadd.f32 %v1206_v32, %v4960_v6  ;;  %v2088_v6 = vadd.f32 %v3671_v48, %v1890_v5  ;;  %v5111_v8 = vpop.permute.xlu1 %2772  ;;  %v1637_v32 = vadd.f32 %v4987_v28, %v1256_v38  ;;  %v1641_v48 = vadd.f32 %v4997_v14, %v1260_v45  ;;  %v2780_v0 = vpop.permute.xlu0 %2779  ;;  %v5331_v59 = vld [vmem:[#allocation20_spill] sm:$0xff] }
 0x16d   : > { %v5085_v40 = vpop.f32.mrf.mxu1  ;;  %v5089_v4 = vpop.f32.mrf.mxu0  ;;  %v1642_v28 = vadd.f32 %v5003_v29, %v1261_v15  ;;  %v1265_v14 = vadd.f32 %v5023_v51, %v4976_v50  ;;  %v5140_v29 = vld [vmem:[%s5293_s3] ss:$0 sm:$0xff]  ;;  %v1892_v24 = vadd.f32 %v5328_v36, %v1635_v55  ;;  %v5335_v55 = vld [vmem:[#allocation18_spill] sm:$0xff] }
 0x16e   : > { %5324 = vst [vmem:[#allocation28_spill] sm:$0xff] %v5085_v40  ;;  %v1888_v40 = vadd.f32 %v1825_v23, %v1631_v25  ;;  %v1636_v37 = vadd.f32 %v4995_v47, %v1255_v31  ;;  %v2089_v47 = vadd.f32 %v5029_v27, %v1891_v63  ;;  %v1894_v56 = vadd.f32 %v5037_v62, %v1637_v32  ;;  %v5327_v50 = vld [vmem:[#allocation5_spill] sm:$0xff]  ;;  %v5329_v62 = vld [vmem:[#allocation14_spill] sm:$0xff] }
 0x16f   : > { %v5095_v12 = vpop.f32.mrf.mxu1  ;;  %v3707_v30 = vpop.f32.mrf.mxu0  ;;  %v2087_v27 = vadd.f32 %v5325_v58, %v1889_v1  ;;  %v5147_v51 = vadd.f32 %v5327_v50, %v1262_v33  ;;  %v1895_v25 = vadd.f32 %v5329_v62, %v1638_v19  ;;  %v5155_v26 = vadd.f32 %v5332_v54, %v1265_v14 }
 0x170   : > { %v2086_v52 = vadd.f32 %v5027_v2, %v1888_v40  ;;  %v5144_v40 = vpop.permute.xlu1 %2783  ;;  %v1893_v5 = vadd.f32 %v5330_v43, %v1636_v37  ;;  %v1898_v19 = vadd.f32 %v5335_v55, %v1641_v48  ;;  %v5165_v33 = vpop.permute.xlu0 %2790 }
 0x171   : > { %v5106_v22 = vpop.f32.mrf.mxu1  ;;  %v2661_v17 = vpop.f32.mrf.mxu0 }
 0x173   : > { %v3689_v41 = vpop.f32.mrf.mxu1  ;;  %v3708_v49 = vpop.f32.mrf.mxu0 }
 0x174   : > { %v2473_v57 = vadd.f32 %v3689_v41, %v2088_v6  ;;  %v5333_v6 = vld [vmem:[#allocation7_spill] sm:$0xff]  ;;  %v5336_v41 = vld [vmem:[#allocation21_spill] sm:$0xff] }
 0x175   : > { %v2408_v10 = vpop.f32.mrf.mxu1  ;;  %v2664_v23 = vpop.f32.mrf.mxu0  ;;  %v5158_v63 = vadd.f32 %v5333_v6, %v1263_v7  ;;  %v1896_v37 = vadd.f32 %v5336_v41, %v1639_v60  ;;  %v5340_v60 = vld [vmem:[#allocation13_spill] sm:$0xff] }
 0x176   : > { %v2726_v21 = vadd.f32 %v3707_v30, %v2473_v57  ;;  %v2471_v2 = vadd.f32 %v2408_v10, %v2086_v52  ;;  %v5337_v10 = vld [vmem:[#allocation10_spill] sm:$0xff]  ;;  %v2091_v58 = vadd.f32 %v5340_v60, %v1893_v5 }
 0x177   : > { %v3690_v44 = vpop.f32.mrf.mxu1  ;;  %v3711_v38 = vpop.f32.mrf.mxu0 }
 0x178   : > { %v2724_v20 = vadd.f32 %v2661_v17, %v2471_v2  ;;  %v2831_v11 = vadd.f32 %v5326_v42, %v2726_v21  ;;  %v2474_v31 = vadd.f32 %v3690_v44, %v2089_v47  ;;  %v5334_v17 = vld [vmem:[#allocation9_spill] sm:$0xff]  ;;  %v2090_v47 = vadd.f32 %v5337_v10, %v1892_v24  ;;  %v5338_v21 = vld [vmem:[#allocation24_spill] sm:$0xff]  ;;  %v5341_v42 = vld [vmem:[#allocation15_spill] sm:$0xff] }
 0x179   : > { %v2411_v35 = vpop.f32.mrf.mxu1  ;;  %v2677_v15 = vpop.f32.mrf.mxu0  ;;  %v2092_v32 = vadd.f32 %v5334_v17, %v1894_v56  ;;  %v1899_v2 = vadd.f32 %v5338_v21, %v1642_v28  ;;  %v5339_v56 = vld [vmem:[#allocation11_spill] sm:$0xff]  ;;  %v5342_v24 = vld [vmem:[#allocation17_spill] sm:$0xff]  ;;  %v1902_v21 = vadd.f32 %v5077_v53, %v5130_v9  ;;  %v5345_v53 = vld [vmem:[#allocation28_spill] sm:$0xff] }
 0x17a   : > { %v2829_v61 = vadd.f32 %v5331_v59, %v2724_v20  ;;  %v2854_v30 = vadd.f32 %v5140_v29, %v2831_v11  ;;  %v2727_v45 = vadd.f32 %v3708_v49, %v2474_v31  ;;  %v2472_v46 = vadd.f32 %v2411_v35, %v2087_v27  ;;  %v5174_v20 = vpop.permute.xlu1 %2794  ;;  %v5343_v35 = vld [vmem:[#allocation19_spill] sm:$0xff] }
 0x17b   : > { %v3693_v18 = vpop.f32.mrf.mxu1  ;;  %v3712_v49 = vpop.f32.mrf.mxu0  ;;  %v2093_v44 = vadd.f32 %v5339_v56, %v1895_v25  ;;  %v2096_v11 = vadd.f32 %v5341_v42, %v1898_v19  ;;  %v2094_v62 = vadd.f32 %v5342_v24, %v1896_v37  ;;  %v2097_v59 = vadd.f32 %v5343_v35, %v1899_v2  ;;  %v5344_v56 = vld [vmem:[#allocation22_spill] sm:$0xff] }
 0x17c   : > { %v2852_v52 = vadd.f32 %v5140_v29, %v2829_v61  ;;  %v2725_v1 = vadd.f32 %v2664_v23, %v2472_v46  ;;  %v2832_v57 = vadd.f32 %v5083_v34, %v2727_v45  ;;  %v2870_v14 = vmul.f32 0.2, %v2854_v30  ;;  %v2802_v19 = vpop.permute.xlu0 %2801 }
 0x17d   : > { %v2477_v7 = vadd.f32 %v3693_v18, %v2092_v32  ;;  %v2424_v48 = vpop.f32.mrf.mxu1  ;;  %v2680_v27 = vpop.f32.mrf.mxu0  ;;  %v1897_v18 = vadd.f32 %v5070_v39, %v5126_v13  ;;  %v1900_v9 = vadd.f32 %v5345_v53, %v5147_v51 }
 0x17e   : > { %v2830_v23 = vadd.f32 %v5075_v3, %v2725_v1  ;;  %v2855_v34 = vadd.f32 %v5140_v29, %v2832_v57  ;;  %v2868_v31 = vmul.f32 0.2, %v2852_v52  ;;  %v2475_v50 = vadd.f32 %v2424_v48, %v2090_v47 }
 0x17f   : > { %v2730_v28 = vadd.f32 %v3711_v38, %v2477_v7  ;;  %v3694_v36 = vpop.f32.mrf.mxu1  ;;  %v3715_v5 = vpop.f32.mrf.mxu0  ;;  %v2886_v61 = vmax.f32 %v2854_v30, %v2870_v14 }
 0x180   : > { %v2853_v25 = vadd.f32 %v5140_v29, %v2830_v23  ;;  %v2871_v43 = vmul.f32 0.2, %v2855_v34  ;;  %v2478_v3 = vadd.f32 %v3694_v36, %v2093_v44  ;;  %v2728_v45 = vadd.f32 %v2677_v15, %v2475_v50 }
 0x181   : > { %v2835_v46 = vadd.f32 %v2780_v0, %v2730_v28  ;;  %v2427_v54 = vpop.f32.mrf.mxu1  ;;  %v2693_v55 = vpop.f32.mrf.mxu0  ;;  %v2884_v41 = vmax.f32 %v2852_v52, %v2868_v31  ;;  %v2095_v44 = vadd.f32 %v5344_v56, %v1897_v18  ;;  %v5346_v28 = vld [vmem:[#allocation25_spill] sm:$0xff]  ;;  %v1903_v36 = vadd.f32 %v5095_v12, %v5155_v26 }
 0x182   : > { %v2869_v6 = vmul.f32 0.2, %v2853_v25  ;;  %v2887_v38 = vmax.f32 %v2855_v34, %v2871_v43  ;;  %v2731_v17 = vadd.f32 %v3712_v49, %v2478_v3  ;;  %v2476_v32 = vadd.f32 %v2427_v54, %v2091_v58  ;;  %v2806_v49 = vpop.permute.xlu1 %2805  ;;  %v2813_v31 = vpop.permute.xlu0 %2812 }
 0x183   : > { %v2833_v37 = vadd.f32 %v5099_v16, %v2728_v45  ;;  %v2858_v1 = vadd.f32 %v5140_v29, %v2835_v46  ;;  %v3697_v57 = vpop.f32.mrf.mxu1  ;;  %v3716_v47 = vpop.f32.mrf.mxu0  ;;  %v2100_v50 = vadd.f32 %v5346_v28, %v1902_v21 }
 0x184   : > { %v2885_v30 = vmax.f32 %v2853_v25, %v2869_v6  ;;  %v3439_v15 = vpack.c.bf16 %v2887_v38, %v2886_v61  ;;  %v2729_v0 = vadd.f32 %v2680_v27, %v2476_v32  ;;  %v2836_v10 = vadd.f32 %v5144_v40, %v2731_v17  ;;  %v5347_v61 = vld [vmem:[#allocation26_spill] sm:$0xff] }
 0x185   : > { %v2856_v2 = vadd.f32 %v5140_v29, %v2833_v37  ;;  %v2874_v39 = vmul.f32 0.2, %v2858_v1  ;;  %v2481_v13 = vadd.f32 %v3697_v57, %v2096_v11  ;;  %v2440_v52 = vpop.f32.mrf.mxu1  ;;  %v2696_v48 = vpop.f32.mrf.mxu0  ;;  %v2098_v45 = vadd.f32 %v5347_v61, %v1900_v9  ;;  %v5348_v37 = vld [vmem:[#allocation27_spill] sm:$0xff] }
 0x186   : > { %v3434_v14 = vpack.c.bf16 %v2885_v30, %v2884_v41  ;;  %3471 = vst [vmem:[%s5193_s30 + $0x8] sm:$0xff] %v3439_v15   ;;  %v2834_v16 = vadd.f32 %v5111_v8, %v2729_v0  ;;  %v2859_v40 = vadd.f32 %v5140_v29, %v2836_v10  ;;  %v2479_v7 = vadd.f32 %v2440_v52, %v2094_v62  ;;  %v2817_v35 = vpop.permute.xlu1 %2816  ;;  %v2824_v30 = vpop.permute.xlu0 %2823 }
 0x187   : > { %v2872_v60 = vmul.f32 0.2, %v2856_v2  ;;  %v2734_v58 = vadd.f32 %v3715_v5, %v2481_v13  ;;  %v3698_v23 = vpop.f32.mrf.mxu1  ;;  %v3719_v8 = vpop.f32.mrf.mxu0  ;;  %v2890_v24 = vmax.f32 %v2858_v1, %v2874_v39  ;;  %v2101_v1 = vadd.f32 %v5348_v37, %v1903_v36 }
 0x188   : > { %3435 = vst [vmem:[%s5193_s30] sm:$0xff] %v3434_v14   ;;  %v2857_v34 = vadd.f32 %v5140_v29, %v2834_v16  ;;  %v2875_v27 = vmul.f32 0.2, %v2859_v40  ;;  %v2732_v42 = vadd.f32 %v2693_v55, %v2479_v7  ;;  %v2482_v11 = vadd.f32 %v3698_v23, %v2097_v59 }
 0x189   : > { %v2839_v62 = vadd.f32 %v2802_v19, %v2734_v58  ;;  %v2443_v25 = vpop.f32.mrf.mxu1  ;;  %v1901_v59 = vadd.f32 %v5106_v22, %v5158_v63  ;;  %v2709_v12 = vpop.f32.mrf.mxu0  ;;  %v2888_v26 = vmax.f32 %v2856_v2, %v2872_v60 }
 0x18a   : > { %v2873_v51 = vmul.f32 0.2, %v2857_v34  ;;  %v2891_v43 = vmax.f32 %v2859_v40, %v2875_v27  ;;  %v2837_v3 = vadd.f32 %v5165_v33, %v2732_v42  ;;  %v2735_v5 = vadd.f32 %v3716_v47, %v2482_v11  ;;  %v2828_v7 = vpop.permute.xlu1 %2827 }
 0x18b   : > { %v2862_v46 = vadd.f32 %v5140_v29, %v2839_v62  ;;  %v2480_v54 = vadd.f32 %v2443_v25, %v2095_v44  ;;  %v3701_v6 = vpop.f32.mrf.mxu1  ;;  %v3720_v47 = vpop.f32.mrf.mxu0 }
 0x18c   : > { %v2889_v38 = vmax.f32 %v2857_v34, %v2873_v51  ;;  %v3449_v17 = vpack.c.bf16 %v2891_v43, %v2890_v24  ;;  %v2840_v32 = vadd.f32 %v2806_v49, %v2735_v5  ;;  %v2860_v55 = vadd.f32 %v5140_v29, %v2837_v3 }
 0x18d   : > { %v2878_v33 = vmul.f32 0.2, %v2862_v46  ;;  %v2733_v19 = vadd.f32 %v2696_v48, %v2480_v54  ;;  %v2485_v18 = vadd.f32 %v3701_v6, %v2100_v50  ;;  %v2456_v41 = vpop.f32.mrf.mxu1  ;;  %v2099_v49 = vadd.f32 %v5089_v4, %v1901_v59  ;;  %v2712_v9 = vpop.f32.mrf.mxu0 }
 0x18e   : > { %v3444_v22 = vpack.c.bf16 %v2889_v38, %v2888_v26  ;;  %3473 = vst [vmem:[%s5193_s30 + $0x18] sm:$0xff] %v3449_v17   ;;  %v2863_v63 = vadd.f32 %v5140_v29, %v2840_v32  ;;  %v2483_v57 = vadd.f32 %v2456_v41, %v2098_v45  ;;  %v2876_v13 = vmul.f32 0.2, %v2860_v55 }
 0x18f   : > { %v2838_v15 = vadd.f32 %v5174_v20, %v2733_v19  ;;  %v2738_v0 = vadd.f32 %v3719_v8, %v2485_v18  ;;  %v3702_v10 = vpop.f32.mrf.mxu1  ;;  %v2894_v52 = vmax.f32 %v2862_v46, %v2878_v33 }
 0x190   : > { %3472 = vst [vmem:[%s5193_s30 + $0x10] sm:$0xff] %v3444_v22   ;;  %v2879_v21 = vmul.f32 0.2, %v2863_v63  ;;  %v2736_v2 = vadd.f32 %v2709_v12, %v2483_v57  ;;  %v2486_v39 = vadd.f32 %v3702_v10, %v2101_v1  ;;  %v2892_v27 = vmax.f32 %v2860_v55, %v2876_v13 }
 0x191   : > { %v2861_v14 = vadd.f32 %v5140_v29, %v2838_v15  ;;  %v2843_v16 = vadd.f32 %v2824_v30, %v2738_v0  ;;  %v2459_v40 = vpop.f32.mrf.mxu1 }
 0x192   : > { %v2895_v20 = vmax.f32 %v2863_v63, %v2879_v21  ;;  %v2841_v48 = vadd.f32 %v2813_v31, %v2736_v2  ;;  %v2739_v56 = vadd.f32 %v3720_v47, %v2486_v39  ;;  %v2484_v44 = vadd.f32 %v2459_v40, %v2099_v49 }
 0x193   : > { %v2877_v53 = vmul.f32 0.2, %v2861_v14  ;;  %v2866_v4 = vadd.f32 %v5140_v29, %v2843_v16 }
 0x194   : > { %v3459_v60 = vpack.c.bf16 %v2895_v20, %v2894_v52  ;;  %v2864_v58 = vadd.f32 %v5140_v29, %v2841_v48  ;;  %v2737_v23 = vadd.f32 %v2712_v9, %v2484_v44  ;;  %v2844_v34 = vadd.f32 %v2828_v7, %v2739_v56 }
 0x195   : > { %v2893_v42 = vmax.f32 %v2861_v14, %v2877_v53  ;;  %v2882_v11 = vmul.f32 0.2, %v2866_v4 }
 0x196   : > { %3475 = vst [vmem:[%s5193_s30 + $0x28] sm:$0xff] %v3459_v60   ;;  %v2842_v31 = vadd.f32 %v2817_v35, %v2737_v23  ;;  %v2867_v8 = vadd.f32 %v5140_v29, %v2844_v34  ;;  %v2880_v50 = vmul.f32 0.2, %v2864_v58 }
 0x197   : > { %v3454_v28 = vpack.c.bf16 %v2893_v42, %v2892_v27  ;;  %v2898_v62 = vmax.f32 %v2866_v4, %v2882_v11 }
 0x198   : > { %v2865_v36 = vadd.f32 %v5140_v29, %v2842_v31  ;;  %v2883_v24 = vmul.f32 0.2, %v2867_v8  ;;  %v2896_v43 = vmax.f32 %v2864_v58, %v2880_v50 }
 0x199   : > { %3474 = vst [vmem:[%s5193_s30 + $0x20] sm:$0xff] %v3454_v28  }
 0x19a   : > { %v2881_v25 = vmul.f32 0.2, %v2865_v36  ;;  %v2899_v51 = vmax.f32 %v2867_v8, %v2883_v24 }
 0x19c   : > { %v2897_v3 = vmax.f32 %v2865_v36, %v2881_v25  ;;  %v3469_v5 = vpack.c.bf16 %v2899_v51, %v2898_v62 }
 0x19e   : > { %v3464_v29 = vpack.c.bf16 %v2897_v3, %v2896_v43  ;;  %3477 = vst [vmem:[%s5193_s30 + $0x38] sm:$0xff] %v3469_v5  }
 0x1a0   : > { %3476 = vst [vmem:[%s5193_s30 + $0x30] sm:$0xff] %v3464_v29  }
 0x1a1   : > { %3850 = shalt.err (!%p3847_p7)
}
 0x1a2   : > { %s3851_s24 = scalar_lea.hbm %s5231_s9, 1024  ;;  %s3855_s6 = scalar_lea.hbm %s5294_s4, 4096 }
 0x1a3   : > { %p3852_p9 = scmp.ne.s32.totalorder %s5231_s9, %s3851_s24  ;;  %p3856_p12 = scmp.lt.s32.totalorder %s5231_s9, %s5294_s4 }
 0x1a4   : > { %p3857_p13 = scmp.lt.s32.totalorder %s3855_s6, %s3851_s24 }
 0x1a5   : > { %p3853_p10 = pnand %p3852_p9, %p4010_p3 }
 0x1a6   : > { %p3858_p0 = por %p3857_p13, %p3856_p12 }
 0x1a7   : > { %p3854_p11 = pneg %p3853_p10 }
 0x1a9   : > { %p3859_p1 = pnand %p3858_p0, %p3854_p11 }
 0x1ab   : > { %3862 = shalt.err (!%p3859_p1)
}
 0x1ac   : > { %s3932_s11 = smov 64   ;;  %s3933_s8 = smov 4  }
 0x1ad   : > { %3736 = dma.vmem_to_hbm [thread:$0]  (%p4010_p3), %s5233_s19, 1024, %s5231_s9, %s5239_s12, %s3932_s11, %s3932_s11, %s3933_s8  }
 0x1ae PF: > { %p3742_p2 = scmp.ge.s32.totalorder %s3929_s22, 2  ;;  %s3012_s13 = sand.u32 1, %s3901_s15  }
 0x1af   : > { %s3013_s14 = scalar_lea.sflag [#allocation3], %s3012_s13 }
 0x1b0   : > { %p3739_p4 = pnand %p3742_p2, %p4019_p8 }
 0x1b2   : > { %p3740_p5 = pneg %p3739_p4 }
 0x1b4   : > { %3896 = dma.done.wait (%p3740_p5), %s3013_s14, 1024  }
 0x1b5   : > { %3898 = vsyncadd (%p3740_p5), %s3013_s14, 4294966272  ;;  %s17_s22 = sadd.s32 1, %s3929_s22   ;;  %s5349_s15 = smov %s3905_s16 }
 0x1b6   : > { %p14_p6 = scmp.ge.s32.totalorder %s17_s22, 6   ;;  %s5350_s16 = smov %s3909_s17 }
 0x1b7   : > { %s5351_s17 = smov %s4028_s7  ;;  %s5352_s18 = smov %s3921_s20 }
 0x1b8   : > { %s5353_s19 = smov %s3925_s21  ;;  %s5354_s20 = smov %s5357_s25 }
 0x1b9   : > { %s5355_s21 = smov %s5361_s26  ;;  %16 = sbr.rel (!%p14_p6) target bundleno = 5 (0x5), region = 79 }
 0x1be   :  { %3018 = vsyncpa [#allocation3], 1 }
 0x1bf   :  { %3020 = vsyncpa [#allocation3 + $0x1], 1 }

</bundles_post_ra>
